<compile_context>
chip_gen: v7x
topology: tpu7x:2x2x1
jax: 0.10.0
libtpu: 0.0.40
codegen_flags: <defaults>
</compile_context>

<pallas_src>
import jax
import jax.numpy as jnp
import numpy as np
from jax.experimental import pallas as pl
from jax.experimental.pallas import tpu as pltpu


def _round_up(x: int, m: int) -> int:
    return ((x + m - 1) // m) * m


def _generation_budgets():
    """Return (sequences-tile byte target, vmem_limit_bytes, min grid steps)."""
    try:
        vmem = int(pltpu.get_tpu_info().vmem_capacity_bytes)
    except Exception:
        vmem = 64 * 1024 * 1024          # conservative fallback (interpret / unknown)
    if vmem >= 96 * 1024 * 1024:
        # v5e / v6e: 128 MiB physical VMEM, 1 TensorCore -> few, large steps.
        return 14 * 1024 * 1024, 96 * 1024 * 1024, 1
    # v7x: 64 MiB physical VMEM, 2 TensorCores -> smaller tiles, >=2 grid steps
    # so dimension_semantics=("parallel",) can shard the batch across cores.
    return 10 * 1024 * 1024, 48 * 1024 * 1024, 2


def bahdanau_kernel(seq_ref, mask_ref, wcol_ref, blend_ref, scores_ref):
    seq = seq_ref[...]                     # (TB, Sp, Dp) f32 sequences tile
    mask = mask_ref[...]                   # (TB, Sp)     f32 mask tile
    wcol = wcol_ref[...]                   # (Dp, 1)      folded (v @ U) column
    tb, s_len, d = seq.shape

    # reactivity = tanh(seq @ U.T @ v.T) = tanh(seq @ (v @ U).T)
    # D-contraction on the MXU: (TB*Sp, Dp) @ (Dp, 1) -> (TB*Sp, 1).
    seq2d = seq.reshape(tb * s_len, d)
    react_col = jnp.dot(seq2d, wcol,
                        preferred_element_type=jnp.float32,
                        precision=jax.lax.Precision.HIGHEST)
    react = jnp.tanh(react_col).reshape(tb, s_len)          # (TB, Sp), Sp on lanes

    # masked_fill(weights == 0, -inf); zero-padded tail positions also get -inf.
    masked = jnp.where(mask == 0, jnp.float32(-jnp.inf), react)

    # Numerically stable softmax over the sequence axis.
    # NOTE: a fully-masked row yields NaN, matching PyTorch's behavior.
    m = jnp.max(masked, axis=1, keepdims=True)              # (TB, 1)
    e = jnp.exp(masked - m)                                  # (TB, Sp)
    s = jnp.sum(e, axis=1, keepdims=True)                   # (TB, 1)
    inv = pl.reciprocal(s, approx=False)                     # exact; EUP slot is idle

    # S-contraction on the MXU using UNNORMALIZED weights; normalize afterwards.
    blended_num = jnp.einsum('bqs,bsd->bqd', e[:, None, :], seq,
                             preferred_element_type=jnp.float32,
                             precision=jax.lax.Precision.HIGHEST)[:, 0, :]  # (TB, Dp)

    blend_ref[...] = (blended_num * inv).astype(blend_ref.dtype)
    scores_ref[...] = (e * inv).astype(scores_ref.dtype)


def bahdanau_attention(sequences, weights, u_w, v_w, *, batch_block=None):
    """sequences: (B,S,D) f32, weights: (B,S) f32 mask,
    u_w: torch-style (A,D) U.weight, v_w: torch-style (1,A) v.weight."""
    B, S, D = sequences.shape

    # Lane-dense padding of S and D to multiples of 128 (no-op when already
    # aligned).  Zero-padded mask positions are masked to -inf (exp -> 0) and
    # zero-padded feature columns contribute nothing to either contraction.
    S_pad = _round_up(S, 128)
    D_pad = _round_up(D, 128)
    seq_p = jnp.pad(sequences.astype(jnp.float32),
                    ((0, 0), (0, S_pad - S), (0, D_pad - D)))
    mask_p = jnp.pad(weights.astype(jnp.float32), ((0, 0), (0, S_pad - S)))

    # Fold the two bias-free Linear layers (tanh is outside both matmuls):
    # seq @ U.T @ v.T == seq @ (v @ U).T.  Pass as a (Dp, 1) column so the
    # in-kernel MXU matmul needs no transpose.
    w_comb = (v_w @ u_w).astype(jnp.float32).reshape(-1)     # (D,)
    w_col = jnp.pad(w_comb, (0, D_pad - D)).reshape(D_pad, 1)

    # --- per-generation batch tile size -------------------------------------
    tile_target, vmem_limit, min_steps = _generation_budgets()
    row_bytes = S_pad * D_pad * 4
    cap = max(1, tile_target // row_bytes)                   # rows per tile
    steps = pl.cdiv(B, cap)
    if B >= 16:                       # only if the batch is splittable into 8s
        steps = max(steps, min_steps)
    if batch_block is not None:
        tb = min(batch_block, B)
    else:
        tb = pl.cdiv(B, steps)        # balanced tiles, no near-empty tail
    if tb < B and tb % 8 != 0:        # (8, 128): 2nd-to-last dim of 2-D blocks
        tb = min(B, _round_up(tb, 8))
    grid = (pl.cdiv(B, tb),)

    # TODO(synk): for very long sequences (tb * S_pad * D_pad * 4 exceeding the
    # tile budget even at tb == 8) add a trailing "arbitrary" grid axis over S
    # with online-softmax scratch accumulators; the threshold is ~half on v7x
    # (64 MiB VMEM) compared with v5e/v6e (128 MiB).

    flops = 4 * B * S_pad * D_pad + 8 * B * S_pad            # two MXU passes + softmax
    transcendentals = 2 * B * S_pad                           # tanh + exp per position
    bytes_accessed = 4 * (B * S_pad * D_pad + 2 * B * S_pad + B * D_pad + D_pad)

    blended_p, scores_p = pl.pallas_call(
        bahdanau_kernel,
        grid=grid,
        in_specs=[
            pl.BlockSpec((tb, S_pad, D_pad), lambda i: (i, 0, 0)),  # sequences tile
            pl.BlockSpec((tb, S_pad), lambda i: (i, 0)),            # mask tile
            pl.BlockSpec((D_pad, 1), lambda i: (0, 0)),             # folded weight
        ],
        out_specs=(
            pl.BlockSpec((tb, D_pad), lambda i: (i, 0)),            # blended
            pl.BlockSpec((tb, S_pad), lambda i: (i, 0)),            # scores
        ),
        out_shape=(jax.ShapeDtypeStruct((B, D_pad), jnp.float32),
                   jax.ShapeDtypeStruct((B, S_pad), jnp.float32)),
        compiler_params=pltpu.CompilerParams(
            dimension_semantics=("parallel",),
            vmem_limit_bytes=vmem_limit),
        cost_estimate=pl.CostEstimate(
            flops=flops,
            transcendentals=transcendentals,
            bytes_accessed=bytes_accessed),
    )(seq_p, mask_p, w_col)

    return blended_p[:, :D], scores_p[:, :S]


def bahdanau_reference(sequences, weights, u_w, v_w):
    # Keeps the original two-matmul formulation of the PyTorch module.
    proj = sequences @ u_w.T
    react = jnp.tanh(proj @ v_w.T)[..., 0]
    masked = jnp.where(weights == 0, -jnp.inf, react)
    scores = jax.nn.softmax(masked, axis=1)
    blended = jnp.einsum('bs,bsd->bd', scores, sequences)
    return blended, scores


if __name__ == "__main__":
    B, S, D, A = 2, 8, 32, 16   # batch, seq_len, sequence_dim, attention_dim

    key = jax.random.PRNGKey(0)
    k_seq, k_mask, k_u, k_v = jax.random.split(key, 4)

    sequences = jax.random.normal(k_seq, (B, S, D), dtype=jnp.float32)
    # mask with some zeros, but guarantee at least one valid position per row
    weights = (jax.random.uniform(k_mask, (B, S)) > 0.3).astype(jnp.float32)
    weights = weights.at[:, 0].set(1.0)

    # Deterministic "Linear" weights (torch layout: (out_features, in_features))
    u_w = jax.random.normal(k_u, (A, D), dtype=jnp.float32) * (1.0 / np.sqrt(D))
    v_w = jax.random.normal(k_v, (1, A), dtype=jnp.float32) * (1.0 / np.sqrt(A))

    blended, scores = bahdanau_attention(sequences, weights, u_w, v_w)
    jax.block_until_ready((blended, scores))

    ref_blended, ref_scores = bahdanau_reference(sequences, weights, u_w, v_w)
    np.testing.assert_allclose(np.asarray(blended), np.asarray(ref_blended),
                               atol=1e-5, rtol=1e-5)
    np.testing.assert_allclose(np.asarray(scores), np.asarray(ref_scores),
                               atol=1e-5, rtol=1e-5)

    print("KERNEL_OK")
</pallas_src>

<mosaic_0001>
module attributes {stable_mosaic.version = 11 : i64} {
  func.func @bahdanau_kernel(%arg0: i32, %arg1: memref<2x128x128xf32, #tpu.memory_space<vmem>>, %arg2: memref<2x128xf32, #tpu.memory_space<vmem>>, %arg3: memref<128x1xf32, #tpu.memory_space<vmem>>, %arg4: memref<2x128xf32, #tpu.memory_space<vmem>>, %arg5: memref<2x128xf32, #tpu.memory_space<vmem>>) attributes {dimension_semantics = [#tpu.dimension_semantics<parallel>], iteration_bounds = array<i64: 1>, scalar_prefetch = 0 : i64, scratch_operands = 0 : i64, tpu.core_type = #tpu.core_type<tc>, window_params = [{transform_indices = @transform_0, window_bounds = array<i64: 2, 128, 128>}, {transform_indices = @transform_1, window_bounds = array<i64: 2, 128>}, {pipeline_mode = #tpu.pipeline_mode<synchronous>, transform_indices = @transform_2, window_bounds = array<i64: 128, 1>}, {transform_indices = @transform_3, window_bounds = array<i64: 2, 128>}, {transform_indices = @transform_4, window_bounds = array<i64: 2, 128>}]} {
    %c0 = arith.constant 0 : index
    %c0_0 = arith.constant 0 : index
    %c0_1 = arith.constant 0 : index
    %0 = vector.load %arg1[%c0, %c0_0, %c0_1] : memref<2x128x128xf32, #tpu.memory_space<vmem>>, vector<2x128x128xf32>
    %c0_2 = arith.constant 0 : index
    %c0_3 = arith.constant 0 : index
    %1 = vector.load %arg2[%c0_2, %c0_3] : memref<2x128xf32, #tpu.memory_space<vmem>>, vector<2x128xf32>
    %c0_4 = arith.constant 0 : index
    %c0_5 = arith.constant 0 : index
    %2 = vector.load %arg3[%c0_4, %c0_5] : memref<128x1xf32, #tpu.memory_space<vmem>>, vector<128x1xf32>
    %3 = vector.shape_cast %0 : vector<2x128x128xf32> to vector<256x128xf32>
    %cst = arith.constant dense<0.000000e+00> : vector<256x1xf32>
    %4 = tpu.matmul %3, %2, %cst {dimension_numbers = #tpu.dot_dimension_numbers<[1], [0], [0], [1], [0, 0, 1, 1], [], []>, precision = #tpu.contract_precision<fp32>} : vector<256x128xf32>, vector<128x1xf32>, vector<256x1xf32> -> vector<256x1xf32>
    %5 = math.tanh %4 : vector<256x1xf32>
    %6 = vector.shape_cast %5 : vector<256x1xf32> to vector<2x128xf32>
    %cst_6 = arith.constant 0.000000e+00 : f32
    %7 = vector.broadcast %cst_6 : f32 to vector<2x128xf32>
    %8 = arith.cmpf oeq, %1, %7 : vector<2x128xf32>
    %cst_7 = arith.constant 0xFF800000 : f32
    %9 = vector.broadcast %cst_7 : f32 to vector<2x128xf32>
    %10 = arith.select %8, %9, %6 : vector<2x128xi1>, vector<2x128xf32>
    %cst_8 = arith.constant dense<0xFF800000> : vector<2xf32>
    %11 = vector.multi_reduction <maximumf>, %10, %cst_8 [1] : vector<2x128xf32> to vector<2xf32>
    %12 = vector.shape_cast %11 : vector<2xf32> to vector<2x1xf32>
    %13 = vector.broadcast %12 : vector<2x1xf32> to vector<2x128xf32>
    %14 = arith.subf %10, %13 : vector<2x128xf32>
    %15 = math.exp %14 : vector<2x128xf32>
    %cst_9 = arith.constant dense<0.000000e+00> : vector<2xf32>
    %16 = vector.multi_reduction <add>, %15, %cst_9 [1] : vector<2x128xf32> to vector<2xf32>
    %17 = vector.shape_cast %16 : vector<2xf32> to vector<2x1xf32>
    %18 = tpu.reciprocal %17 : vector<2x1xf32> -> vector<2x1xf32>
    %19 = vector.shape_cast %15 : vector<2x128xf32> to vector<2x1x128xf32>
    "tpu.trace_start"() <{level = 10 : i32, message = "bqs,bsd->bqd"}> : () -> ()
    %cst_10 = arith.constant dense<0.000000e+00> : vector<2x1x128xf32>
    %20 = tpu.matmul %19, %0, %cst_10 {dimension_numbers = #tpu.dot_dimension_numbers<[2], [1], [1], [2], [0, 0, 0, 1, 1, 2], [0], [0]>, precision = #tpu.contract_precision<fp32>} : vector<2x1x128xf32>, vector<2x128x128xf32>, vector<2x1x128xf32> -> vector<2x1x128xf32>
    "tpu.trace_stop"() : () -> ()
    %21 = vector.shape_cast %20 : vector<2x1x128xf32> to vector<2x128xf32>
    %22 = vector.broadcast %18 : vector<2x1xf32> to vector<2x128xf32>
    %23 = arith.mulf %21, %22 : vector<2x128xf32>
    %c0_11 = arith.constant 0 : index
    %c0_12 = arith.constant 0 : index
    %24 = vector.load %arg4[%c0_11, %c0_12] : memref<2x128xf32, #tpu.memory_space<vmem>>, vector<2x128xf32>
    tpu.vector_store %arg4[%c0_11, %c0_12], %23 {strides = array<i32>} : memref<2x128xf32, #tpu.memory_space<vmem>>, vector<2x128xf32>,
    %25 = vector.broadcast %18 : vector<2x1xf32> to vector<2x128xf32>
    %26 = arith.mulf %15, %25 : vector<2x128xf32>
    %c0_13 = arith.constant 0 : index
    %c0_14 = arith.constant 0 : index
    %27 = vector.load %arg5[%c0_13, %c0_14] : memref<2x128xf32, #tpu.memory_space<vmem>>, vector<2x128xf32>
    tpu.vector_store %arg5[%c0_13, %c0_14], %26 {strides = array<i32>} : memref<2x128xf32, #tpu.memory_space<vmem>>, vector<2x128xf32>,
    return
  }
  func.func @transform_0(%arg0: i32) -> (i32, i32, i32) {
    %c0_i32 = arith.constant 0 : i32
    %c0_i32_0 = arith.constant 0 : i32
    %c0_i32_1 = arith.constant 0 : i32
    return %arg0, %c0_i32, %c0_i32_0 : i32, i32, i32
  }
  func.func @transform_1(%arg0: i32) -> (i32, i32) {
    %c0_i32 = arith.constant 0 : i32
    %c0_i32_0 = arith.constant 0 : i32
    return %arg0, %c0_i32 : i32, i32
  }
  func.func @transform_2(%arg0: i32) -> (i32, i32) {
    %c0_i32 = arith.constant 0 : i32
    %c0_i32_0 = arith.constant 0 : i32
    %c0_i32_1 = arith.constant 0 : i32
    return %c0_i32, %c0_i32_0 : i32, i32
  }
  func.func @transform_3(%arg0: i32) -> (i32, i32) {
    %c0_i32 = arith.constant 0 : i32
    %c0_i32_0 = arith.constant 0 : i32
    return %arg0, %c0_i32 : i32, i32
  }
  func.func @transform_4(%arg0: i32) -> (i32, i32) {
    %c0_i32 = arith.constant 0 : i32
    %c0_i32_0 = arith.constant 0 : i32
    return %arg0, %c0_i32 : i32, i32
  }
}

</mosaic_0001>

<bundles_post_ra>
// kernel: tpu_custom_call.1
= control target key start
LH: loop header
LB: loop body
LE: loop exit
PB: predicated region body
PF: predicated region fallthrough
CT: control target
= control target key end

     0   :  { %10 = vsyncpa [#allocation3], 0  ;;  %s7522_s0 = inlined_call_operand.hbm [shape: f32[2,128,128], index: 0, kind: input, shape index: {}]   ;;  %s7523_s1 = inlined_call_operand.vmem [shape: f32[2,128], index: 1, kind: input, shape index: {}]   ;;  %s7524_s2 = inlined_call_operand.vmem [shape: f32[128,1], index: 2, kind: input, shape index: {}]   ;;  %s7525_s3 = inlined_call_operand.hbm [shape: f32[2,128], index: 3, kind: output, shape index: {0}]   ;;  %s7526_s4 = inlined_call_operand.hbm [shape: f32[2,128], index: 4, kind: output, shape index: {1}]  }
   0x1   :  { %11 = vsyncpa [#allocation4], 0 }
   0x2   :  { %12 = vsyncpa [#allocation7], 0  ;;  %s5975_s15 = smov [#allocation2]   ;;  %s5903_s19 = scalar_lea.hbm %s7522_s0, 4096 }
   0x3   :  { %s18_s16 = sshll.u32 %s5975_s15, 4  ;;  %p5904_p0 = scmp.ne.s32.totalorder %s7522_s0, %s5903_s19  ;;  %s19_s16 = int_to_ptr.vmem [resolvable:$true] %s18_s16 }
   0x4   :  { %p5907_p1 = scmp.lt.u32.totalorder %s5903_s19, %s7522_s0 }
   0x6   :  { %p5909_p2 = pnand %p5907_p1, %p5904_p0 }
   0x8   :  { %5912 = shalt.err (!%p5909_p2)
}
   0x9   :  { %s5913_s24 = scalar_lea.vmem %s19_s16, 4096  ;;  %p5918_p4 = scmp.lt.s32.totalorder %s19_s16, %s19_s16 }
   0xa   :  { %p5914_p3 = scmp.ne.s32.totalorder %s19_s16, %s5913_s24  ;;  %p5919_p5 = scmp.lt.s32.totalorder %s5913_s24, %s5913_s24 }
   0xc   :  { %p5920_p6 = por %p5919_p5, %p5918_p4 }
   0xe   :  { %p5921_p7 = pnand %p5920_p6, %p5914_p3 }
  0x10   :  { %5924 = shalt.err (!%p5921_p7)
}
  0x11   :  { %s5976_s25 = smov 128   ;;  %s5977_s26 = smov 8  }
  0x12   :  { %24 = dma.hbm_to_vmem [thread:$0]  %s7522_s0, 4096, %s19_s16, [#allocation3], %s5976_s25, %s5976_s25, %s5977_s26  }
  0x13   :  { %5969 = dma.done.wait [#allocation3], 4096  }
  0x14   :  { %5970 = vsyncadd [#allocation3], 4294963200  ;;  %v65_v0 = vld [vmem:[%s7524_s2] sm:$0xff]  ;;  %v66_v1 = vld [vmem:[%s7524_s2 + $0x8] sm:$0xff]  ;;  %vm2227_vm0 = vcmask 130112   ;;  %vm2234_vm1 = vcmask 195712  }
  0x15   :  { %v6031_v2 = vld [vmem:[%s7524_s2 + $0x10] sm:$0xff]  ;;  %v82_v3 = vand.u32 4294901760, %v65_v0  ;;  %v85_v4 = vand.u32 4294901760, %v66_v1  ;;  %v6036_v5 = vld [vmem:[%s7524_s2 + $0x18] sm:$0xff]  ;;  %v6042_v7 = vld [vmem:[%s7524_s2 + $0x20] sm:$0xff]  ;;  %vm2241_vm2 = vcmask 261312  }
  0x16   :  { %v88_v6 = vand.u32 4294901760, %v6031_v2  ;;  %v6047_v8 = vld [vmem:[%s7524_s2 + $0x28] sm:$0xff]  ;;  %v91_v9 = vand.u32 4294901760, %v6036_v5  ;;  %v7540_v10 = vand.u32 4294901760, %v6042_v7  ;;  %v6055_v12 = vld [vmem:[%s7524_s2 + $0x30] sm:$0xff]  ;;  %v6060_v13 = vld [vmem:[%s7524_s2 + $0x38] sm:$0xff] }
  0x17   :  { %v7539_v11 = vand.u32 4294901760, %v6047_v8  ;;  %v6065_v14 = vld [vmem:[%s7524_s2 + $0x40] sm:$0xff]  ;;  %v6067_v15 = vpack.c.bf16 %v85_v4, %v82_v3  ;;  %v7538_v16 = vand.u32 4294901760, %v6055_v12  ;;  %v7537_v17 = vand.u32 4294901760, %v6060_v13  ;;  %v6074_v18 = vld [vmem:[%s7524_s2 + $0x48] sm:$0xff]  ;;  %v6080_v20 = vld [vmem:[%s7524_s2 + $0x50] sm:$0xff] }
  0x18   :  { %v7536_v19 = vand.u32 4294901760, %v6065_v14  ;;  %v6085_v21 = vld [vmem:[%s7524_s2 + $0x58] sm:$0xff]  ;;  %v6091_v22 = vpack.c.bf16 %v91_v9, %v88_v6  ;;  %v7535_v24 = vand.u32 4294901760, %v6074_v18  ;;  %v7534_v25 = vand.u32 4294901760, %v6080_v20  ;;  %v6104_v26 = vld [vmem:[%s7524_s2 + $0x60] sm:$0xff]  ;;  %v6109_v27 = vld [vmem:[%s7524_s2 + $0x68] sm:$0xff] }
  0x19   :  { %7774 = vst [vmem:[#allocation11_spill] sm:$0xff] %v6067_v15  ;;  %v6097_v23 = vpack.c.bf16 %v7539_v11, %v7540_v10  ;;  %v6114_v28 = vld [vmem:[%s7524_s2 + $0x70] sm:$0xff]  ;;  %5164 = vmatprep.subr.bf16.mxu0 %v6067_v15  ;;  %v6121_v29 = vpack.c.bf16 %v7537_v17, %v7538_v16  ;;  %v7533_v30 = vand.u32 4294901760, %v6085_v21  ;;  %v7532_v31 = vand.u32 4294901760, %v6104_v26  ;;  %v6129_v33 = vld [vmem:[%s7524_s2 + $0x78] sm:$0xff]  ;;  %v32_v34 = vld [vmem:[#allocation2] sm:$0xff] }
  0x1a   :  { %7775 = vst [vmem:[#allocation12_spill] sm:$0xff] %v6091_v22  ;;  %v7531_v32 = vand.u32 4294901760, %v6109_v27  ;;  %v33_v35 = vld [vmem:[#allocation2 + $0x8] sm:$0xff]  ;;  %5166 = vmatpush3.bf16.msra.mxu0 %v6067_v15  ;;  %v6136_v36 = vpack.c.bf16 %v7535_v24, %v7536_v19  ;;  %v7530_v37 = vand.u32 4294901760, %v6114_v28  ;;  %v7529_v38 = vand.u32 4294901760, %v6129_v33  ;;  %v34_v40 = vld [vmem:[#allocation2 + $0x10] sm:$0xff] }
  0x1b   :  { %7776 = vst [vmem:[#allocation13_spill] sm:$0xff] %v6097_v23  ;;  %7777 = vst [vmem:[#allocation14_spill] sm:$0xff] %v6121_v29  ;;  %v6140_v39 = vand.u32 4294901760, %v32_v34  ;;  %v35_v41 = vld [vmem:[#allocation2 + $0x18] sm:$0xff]  ;;  %v36_v42 = vld [vmem:[#allocation2 + $0x20] sm:$0xff]  ;;  %5168 = vmatprep.subr.bf16.mxu0 %v6091_v22  ;;  %v6147_v43 = vpack.c.bf16 %v7533_v30, %v7534_v25  ;;  %v6155_v45 = vand.u32 4294901760, %v33_v35  ;;  %v6157_v46 = vsub.f32 %v65_v0, %v82_v3 }
  0x1c   :  { %7778 = vst [vmem:[#allocation15_spill] sm:$0xff] %v6136_v36  ;;  %v6153_v44 = vpack.c.bf16 %v7531_v32, %v7532_v31  ;;  %v37_v47 = vld [vmem:[#allocation2 + $0x28] sm:$0xff]  ;;  %v6163_v48 = vpack.c.bf16 %v7529_v38, %v7530_v37  ;;  %v6168_v50 = vsub.f32 %v66_v1, %v85_v4  ;;  %v6170_v51 = vand.u32 4294901760, %v34_v40  ;;  %v39_v32 = vld [vmem:[#allocation2 + $0x38] sm:$0xff]  ;;  %v40_v24 = vld [vmem:[#allocation2 + $0x40] sm:$0xff] }
  0x1d   :  { %7779 = vst [vmem:[#allocation16_spill] sm:$0xff] %v6147_v43  ;;  %v6166_v49 = vsub.f32 %v32_v34, %v6140_v39  ;;  %v6173_v52 = vsub.f32 %v33_v35, %v6155_v45  ;;  %v7528_v53 = vand.u32 4294901760, %v6157_v46  ;;  %v6176_v54 = vand.u32 4294901760, %v35_v41  ;;  %v41_v19 = vld [vmem:[#allocation2 + $0x48] sm:$0xff] }
  0x1e   :  { %7780 = vst [vmem:[#allocation17_spill] sm:$0xff] %v6153_v44  ;;  %7781 = vst [vmem:[#allocation18_spill] sm:$0xff] %v6163_v48  ;;  %v6178_v55 = vand.u32 4294901760, %v36_v42  ;;  %5170 = vmatpush3.bf16.msra.mxu0 %v6091_v22  ;;  %v7527_v57 = vand.u32 4294901760, %v6168_v50  ;;  %v6186_v58 = vsub.f32 %v34_v40, %v6170_v51  ;;  %v6188_v59 = vand.u32 4294901760, %v37_v47 }
  0x1f   :  { %7782 = vst [vmem:[#allocation19_spill] sm:$0xff] %v6166_v49  ;;  %7783 = vst [vmem:[#allocation20_spill] sm:$0xff] %v6173_v52  ;;  %v6182_v56 = vand.u32 4294901760, %v6166_v49  ;;  %5172 = vmatprep.subr.bf16.mxu0 %v6097_v23  ;;  %v6192_v60 = vand.u32 4294901760, %v6173_v52  ;;  %v486_v61 = vsub.f32 %v6157_v46, %v7528_v53  ;;  %v6198_v62 = vsub.f32 %v35_v41, %v6176_v54 }
  0x20   :  { %7785 = vst [vmem:[#allocation22_spill] sm:$0xff] %v6186_v58  ;;  %v6201_v63 = vsub.f32 %v36_v42, %v6178_v55  ;;  %v493_v1 = vsub.f32 %v6168_v50, %v7527_v57  ;;  %v6209_v3 = vand.u32 4294901760, %v6186_v58  ;;  %v6212_v4 = vsub.f32 %v37_v47, %v6188_v59 }
  0x21   :  { %7784 = vst [vmem:[#allocation21_spill] sm:$0xff] %v6182_v56  ;;  %7786 = vst [vmem:[#allocation23_spill] sm:$0xff] %v6192_v60  ;;  %v165_v0 = vsub.f32 %v6166_v49, %v6182_v56  ;;  %v175_v34 = vsub.f32 %v6173_v52, %v6192_v60  ;;  %v487_v35 = vand.u32 4294901760, %v486_v61  ;;  %v6217_v40 = vand.u32 4294901760, %v6198_v62 }
  0x22   :  { %7787 = vst [vmem:[#allocation24_spill] sm:$0xff] %v6198_v62  ;;  %7788 = vst [vmem:[#allocation25_spill] sm:$0xff] %v6201_v63  ;;  %v6220_v41 = vand.u32 4294901760, %v6201_v63  ;;  %5174 = vmatpush3.bf16.msra.mxu0 %v6097_v23  ;;  %v494_v57 = vand.u32 4294901760, %v493_v1  ;;  %v185_v53 = vsub.f32 %v6186_v58, %v6209_v3  ;;  %v6228_v47 = vand.u32 4294901760, %v6212_v4  ;;  %v38_v1 = vld [vmem:[#allocation2 + $0x30] sm:$0xff] }
  0x23   :  { %7789 = vst [vmem:[#allocation26_spill] sm:$0xff] %v6209_v3  ;;  %7790 = vst [vmem:[#allocation27_spill] sm:$0xff] %v6212_v4  ;;  %v6223_v42 = vand.u32 4294901760, %v165_v0  ;;  %5176 = vmatprep.subr.bf16.mxu0 %v6121_v29  ;;  %v6231_v61 = vand.u32 4294901760, %v175_v34  ;;  %v195_v38 = vsub.f32 %v6198_v62, %v6217_v40  ;;  %v6240_v0 = vsub.f32 %v6031_v2, %v88_v6  ;;  %v43_v3 = vld [vmem:[#allocation2 + $0x58] sm:$0xff]  ;;  %v48_v62 = vld [vmem:[#allocation2 + $0x80] sm:$0xff] }
  0x24   :  { %7791 = vst [vmem:[#allocation28_spill] sm:$0xff] %v6217_v40  ;;  %7792 = vst [vmem:[#allocation29_spill] sm:$0xff] %v6220_v41  ;;  %v205_v37 = vsub.f32 %v6201_v63, %v6220_v41  ;;  %v6243_v31 = vpack.c.bf16 %v494_v57, %v487_v35  ;;  %v6245_v30 = vand.u32 4294901760, %v185_v53  ;;  %v215_v34 = vsub.f32 %v6212_v4, %v6228_v47 }
  0x25   :  { %7793 = vst [vmem:[#allocation30_spill] sm:$0xff] %v6223_v42  ;;  %7794 = vst [vmem:[#allocation31_spill] sm:$0xff] %v6228_v47  ;;  %4295 = vmatprep.mubr.f32.mxu0 %v6223_v42  ;;  %v6252_v25 = vsub.f32 %v6036_v5, %v91_v9  ;;  %v6256_v6 = vand.u32 4294901760, %v195_v38  ;;  %v7544_v53 = vand.u32 4294901760, %v6240_v0  ;;  %v6265_v16 = vand.u32 4294901760, %v38_v1  ;;  %v42_v42 = vld [vmem:[#allocation2 + $0x50] sm:$0xff] }
  0x26   :  { %7795 = vst [vmem:[#allocation32_spill] sm:$0xff] %v6231_v61  ;;  %7796 = vst [vmem:[#allocation33_spill] sm:$0xff] %v6245_v30  ;;  %v6258_v17 = vand.u32 4294901760, %v205_v37  ;;  %5178 = vmatpush3.bf16.msra.mxu0 %v6121_v29  ;;  %v6262_v57 = vand.u32 4294901760, %v215_v34  ;;  %v6267_v5 = vand.u32 4294901760, %v39_v32  ;;  %v6275_v38 = vand.u32 4294901760, %v40_v24 }
  0x27   :  { %7797 = vst [vmem:[#allocation34_spill] sm:$0xff] %v6252_v25  ;;  %7798 = vst [vmem:[#allocation35_spill] sm:$0xff] %v6256_v6  ;;  %v7549_v35 = vand.u32 4294901760, %v6252_v25  ;;  %5180 = vmatprep.subr.bf16.mxu0 %v6136_v36  ;;  %v500_v37 = vsub.f32 %v6240_v0, %v7544_v53  ;;  %v6277_v2 = vand.u32 4294901760, %v41_v19  ;;  %v6285_v10 = vsub.f32 %v38_v1, %v6265_v16 }
  0x28   :  { %7799 = vst [vmem:[#allocation36_spill] sm:$0xff] %v6258_v17  ;;  %7800 = vst [vmem:[#allocation37_spill] sm:$0xff] %v6262_v57  ;;  %v6288_v9 = vsub.f32 %v39_v32, %v6267_v5  ;;  %v6291_v53 = vsub.f32 %v40_v24, %v6275_v38  ;;  %v7805_v34 = vand.u32 4294901760, %v6042_v7  ;;  %v7808_v24 = vand.u32 4294901760, %v6047_v8 }
  0x29   :  { %v507_v11 = vsub.f32 %v6252_v25, %v7549_v35  ;;  %7801 = vst [vmem:[#allocation38_spill] sm:$0xff] %v6285_v10  ;;  %v501_v47 = vand.u32 4294901760, %v500_v37  ;;  %v6294_v41 = vsub.f32 %v41_v19, %v6277_v2  ;;  %v6303_v35 = vand.u32 4294901760, %v6285_v10 }
  0x2a   :  { %7802 = vst [vmem:[#allocation39_spill] sm:$0xff] %v6288_v9  ;;  %7803 = vst [vmem:[#allocation40_spill] sm:$0xff] %v6291_v53  ;;  %v6299_v40 = vsub.f32 %v6042_v7, %v7805_v34  ;;  %5182 = vmatpush3.bf16.msra.mxu0 %v6136_v36  ;;  %v6306_v32 = vand.u32 4294901760, %v6288_v9  ;;  %v6311_v37 = vsub.f32 %v6047_v8, %v7808_v24  ;;  %v6315_v19 = vand.u32 4294901760, %v6291_v53 }
  0x2b   :  { %7804 = vst [vmem:[#allocation41_spill] sm:$0xff] %v6294_v41  ;;  %v508_v1 = vand.u32 4294901760, %v507_v11  ;;  %7806 = vst [vmem:[#allocation42_spill] sm:$0xff] %v6303_v35  ;;  %5184 = vmatprep.subr.bf16.mxu0 %v6147_v43  ;;  %v6318_v7 = vand.u32 4294901760, %v6294_v41  ;;  %v6321_v34 = vand.u32 4294901760, %v42_v42  ;;  %v225_v56 = vsub.f32 %v6285_v10, %v6303_v35  ;;  %v46_v10 = vld [vmem:[#allocation2 + $0x70] sm:$0xff] }
  0x2c   :  { %7807 = vst [vmem:[#allocation43_spill] sm:$0xff] %v6306_v32  ;;  %7809 = vst [vmem:[#allocation44_spill] sm:$0xff] %v6315_v19  ;;  %v7572_v11 = vand.u32 4294901760, %v6299_v40  ;;  %v235_v8 = vsub.f32 %v6288_v9, %v6306_v32  ;;  %v7579_v24 = vand.u32 4294901760, %v6311_v37  ;;  %v245_v36 = vsub.f32 %v6291_v53, %v6315_v19 }
  0x2d   :  { %7810 = vst [vmem:[#allocation45_spill] sm:$0xff] %v6318_v7  ;;  %v6323_v60 = vpack.c.bf16 %v508_v1, %v501_v47  ;;  %v255_v29 = vsub.f32 %v6294_v41, %v6318_v7  ;;  %v6338_v47 = vsub.f32 %v42_v42, %v6321_v34  ;;  %v44_v1 = vld [vmem:[#allocation2 + $0x60] sm:$0xff]  ;;  %v6341_v35 = vand.u32 4294901760, %v225_v56  ;;  %v45_v7 = vld [vmem:[#allocation2 + $0x68] sm:$0xff] }
  0x2e   :  { %v514_v4 = vsub.f32 %v6299_v40, %v7572_v11  ;;  %5186 = vmatpush3.bf16.msra.mxu0 %v6147_v43  ;;  %v6343_v32 = vand.u32 4294901760, %v235_v8  ;;  %v521_v19 = vsub.f32 %v6311_v37, %v7579_v24  ;;  %v6348_v53 = vand.u32 4294901760, %v43_v3 }
  0x2f   :  { %7811 = vst [vmem:[#allocation46_spill] sm:$0xff] %v6338_v47  ;;  %7812 = vst [vmem:[#allocation47_spill] sm:$0xff] %v6341_v35  ;;  %5188 = vmatprep.subr.bf16.mxu0 %v6153_v44  ;;  %v6351_v11 = vand.u32 4294901760, %v245_v36  ;;  %v6353_v42 = vand.u32 4294901760, %v255_v29  ;;  %v6356_v43 = vand.u32 4294901760, %v6338_v47  ;;  %v6363_v24 = vand.u32 4294901760, %v44_v1 }
  0x30   :  { %7813 = vst [vmem:[#allocation48_spill] sm:$0xff] %v6343_v32  ;;  %v515_v41 = vand.u32 4294901760, %v514_v4  ;;  %v522_v8 = vand.u32 4294901760, %v521_v19  ;;  %v6361_v9 = vsub.f32 %v43_v3, %v6348_v53  ;;  %v6369_v4 = vand.u32 4294901760, %v45_v7  ;;  %v47_v19 = vld [vmem:[#allocation2 + $0x78] sm:$0xff] }
  0x31   :  { %7814 = vst [vmem:[#allocation49_spill] sm:$0xff] %v6351_v11  ;;  %7815 = vst [vmem:[#allocation50_spill] sm:$0xff] %v6353_v42  ;;  %v265_v29 = vsub.f32 %v6338_v47, %v6356_v43  ;;  %v7818_v23 = vand.u32 4294901760, %v6055_v12  ;;  %v6383_v36 = vsub.f32 %v44_v1, %v6363_v24  ;;  %v6416_v58 = vand.u32 4294901760, %v48_v62 }
  0x32   :  { %7816 = vst [vmem:[#allocation51_spill] sm:$0xff] %v6356_v43  ;;  %7817 = vst [vmem:[#allocation52_spill] sm:$0xff] %v6361_v9  ;;  %5190 = vmatpush3.bf16.msra.mxu0 %v6153_v44  ;;  %v6377_v3 = vpack.c.bf16 %v522_v8, %v515_v41  ;;  %v6380_v56 = vand.u32 4294901760, %v6361_v9  ;;  %v7821_v43 = vand.u32 4294901760, %v6060_v13  ;;  %v6397_v8 = vand.u32 4294901760, %v46_v10 }
  0x33   :  { %v6374_v63 = vsub.f32 %v6055_v12, %v7818_v23  ;;  %7820 = vst [vmem:[#allocation54_spill] sm:$0xff] %v6383_v36  ;;  %5192 = vmatprep.subr.bf16.mxu0 %v6163_v48  ;;  %v6391_v12 = vand.u32 4294901760, %v265_v29  ;;  %v6394_v23 = vsub.f32 %v45_v7, %v6369_v4  ;;  %v6402_v44 = vand.u32 4294901760, %v6383_v36  ;;  %7829 = vst [vmem:[#allocation62_spill] sm:$0xff] %v6416_v58 }
  0x34   :  { %7819 = vst [vmem:[#allocation53_spill] sm:$0xff] %v6380_v56  ;;  %v6388_v47 = vsub.f32 %v6060_v13, %v7821_v43  ;;  %v275_v1 = vsub.f32 %v6361_v9, %v6380_v56  ;;  %v6405_v43 = vand.u32 4294901760, %v47_v19  ;;  %v6414_v22 = vsub.f32 %v46_v10, %v6397_v8 }
  0x35   :  { %7823 = vst [vmem:[#allocation56_spill] sm:$0xff] %v6391_v12  ;;  %7824 = vst [vmem:[#allocation57_spill] sm:$0xff] %v6394_v23  ;;  %v7606_v41 = vand.u32 4294901760, %v6374_v63  ;;  %v6408_v29 = vand.u32 4294901760, %v6394_v23  ;;  %v285_v13 = vsub.f32 %v6383_v36, %v6402_v44  ;;  %vm2248_vm3 = vcmask 326912  }
  0x36   :  { %7822 = vst [vmem:[#allocation55_spill] sm:$0xff] %v6388_v47  ;;  %7825 = vst [vmem:[#allocation58_spill] sm:$0xff] %v6402_v44  ;;  %5194 = vmatpush3.bf16.msra.mxu0 %v6163_v48  ;;  %v6419_v56 = vand.u32 4294901760, %v275_v1  ;;  %v7831_v9 = vand.u32 4294901760, %v6388_v47  ;;  %v6427_v49 = vsub.f32 %v47_v19, %v6405_v43  ;;  %v6433_v1 = vand.u32 4294901760, %v6414_v22  ;;  %v50_v44 = vld [vmem:[#allocation2 + $0x90] sm:$0xff] }
  0x37   :  { %7826 = vst [vmem:[#allocation59_spill] sm:$0xff] %v6405_v43  ;;  %7827 = vst [vmem:[#allocation60_spill] sm:$0xff] %v6408_v29  ;;  %v528_v7 = vsub.f32 %v6374_v63, %v7606_v41  ;;  %v49_v41 = vld [vmem:[#allocation2 + $0x88] sm:$0xff]  ;;  %5196 = vmatprep.subr.bf16.mxu0 %v6243_v31  ;;  %v295_v10 = vsub.f32 %v6394_v23, %v6408_v29  ;;  %v6436_v48 = vsub.f32 %v48_v62, %v6416_v58  ;;  %vm2255_vm4 = vcmask 392512  }
  0x38   :  { %7828 = vst [vmem:[#allocation61_spill] sm:$0xff] %v6414_v22  ;;  %7830 = vst [vmem:[#allocation63_spill] sm:$0xff] %v6419_v56  ;;  %v535_v52 = vsub.f32 %v6388_v47, %v7831_v9  ;;  %v6440_v36 = vand.u32 4294901760, %v285_v13  ;;  %v6443_v43 = vand.u32 4294901760, %v6427_v49  ;;  %v6453_v23 = vand.u32 4294901760, %v49_v41 }
  0x39   :  { %7832 = vst [vmem:[#allocation64_spill] sm:$0xff] %v6427_v49  ;;  %v529_v15 = vand.u32 4294901760, %v528_v7  ;;  %7833 = vst [vmem:[#allocation65_spill] sm:$0xff] %v6433_v1  ;;  %4296 = vmatmul.mubr.f32.vlgmr.msra.gmra.mrb[0].mxu0 %v6231_v61  ;;  %v6446_v29 = vand.u32 4294901760, %v295_v10  ;;  %v305_v7 = vsub.f32 %v6414_v22, %v6433_v1  ;;  %v6451_v62 = vand.u32 4294901760, %v6436_v48  ;;  %v51_v1 = vld [vmem:[#allocation2 + $0x98] sm:$0xff] }
  0x3a   :  { %7834 = vst [vmem:[#allocation66_spill] sm:$0xff] %v6436_v48  ;;  %7835 = vst [vmem:[#allocation67_spill] sm:$0xff] %v6440_v36  ;;  %v536_v19 = vand.u32 4294901760, %v535_v52  ;;  %5198 = vmatpush3.bf16.msra.mxu0 %v6243_v31  ;;  %4298 = vmatprep.mubr.f32.mxu0 %v6245_v30  ;;  %v315_v13 = vsub.f32 %v6427_v49, %v6443_v43  ;;  %v7840_v10 = vand.u32 4294901760, %v6065_v14  ;;  %v6466_v61 = vand.u32 4294901760, %v50_v44  ;;  %v52_v22 = vld [vmem:[#allocation2 + $0xa0] sm:$0xff] }
  0x3b   :  { %7836 = vst [vmem:[#allocation68_spill] sm:$0xff] %v6443_v43  ;;  %7837 = vst [vmem:[#allocation69_spill] sm:$0xff] %v6446_v29  ;;  %5200 = vmatprep.subr.bf16.mxu0 %v6323_v60  ;;  %v6471_v30 = vand.u32 4294901760, %v305_v7  ;;  %v53_v7 = vld [vmem:[#allocation2 + $0xa8] sm:$0xff]  ;;  %vm2262_vm5 = vcmask 458112   ;;  %vm2269_vm6 = vcmask 523712  }
  0x3c   :  { %7838 = vst [vmem:[#allocation70_spill] sm:$0xff] %v6451_v62  ;;  %7839 = vst [vmem:[#allocation71_spill] sm:$0xff] %v6453_v23  ;;  %v6457_v52 = vpack.c.bf16 %v536_v19, %v529_v15  ;;  %v6464_v9 = vsub.f32 %v6065_v14, %v7840_v10  ;;  %v325_v15 = vsub.f32 %v6436_v48, %v6451_v62  ;;  %v6478_v43 = vand.u32 4294901760, %v315_v13 }
  0x3d   :  { %7841 = vst [vmem:[#allocation72_spill] sm:$0xff] %v6466_v61  ;;  %7842 = vst [vmem:[#allocation73_spill] sm:$0xff] %v6471_v30  ;;  %v6476_v19 = vsub.f32 %v49_v41, %v6453_v23  ;;  %v7845_v10 = vand.u32 4294901760, %v6074_v18  ;;  %v6487_v58 = vsub.f32 %v50_v44, %v6466_v61  ;;  %4299 = vmatmul.mubr.f32.gmra.mrb[2].mxu0 %v6256_v6  ;;  %v6495_v13 = vand.u32 4294901760, %v51_v1 }
  0x3e   :  { %7844 = vst [vmem:[#allocation75_spill] sm:$0xff] %v6478_v43  ;;  %v7639_v14 = vand.u32 4294901760, %v6464_v9  ;;  %v6490_v31 = vand.u32 4294901760, %v325_v15  ;;  %v6497_v62 = vand.u32 4294901760, %v52_v22  ;;  %4301 = vmatprep.mubr.f32.mxu0 %v6258_v17  ;;  %5202 = vmatpush3.bf16.msra.mxu0 %v6323_v60  ;;  %v7856_v23 = vand.u32 4294901760, %v6080_v20 }
  0x3f   :  { %7843 = vst [vmem:[#allocation74_spill] sm:$0xff] %v6476_v19  ;;  %v6484_v49 = vsub.f32 %v6074_v18, %v7845_v10  ;;  %7847 = vst [vmem:[#allocation77_spill] sm:$0xff] %v6487_v58  ;;  %v6493_v41 = vand.u32 4294901760, %v6476_v19  ;;  %v6508_v10 = vand.u32 4294901760, %v6487_v58  ;;  %5204 = vmatprep.subr.bf16.mxu0 %v6377_v3  ;;  %v6514_v17 = vsub.f32 %v51_v1, %v6495_v13 }
  0x40   :  { %7848 = vst [vmem:[#allocation78_spill] sm:$0xff] %v6490_v31  ;;  %7850 = vst [vmem:[#allocation80_spill] sm:$0xff] %v6495_v13  ;;  %v542_v44 = vsub.f32 %v6464_v9, %v7639_v14  ;;  %v6517_v60 = vsub.f32 %v52_v22, %v6497_v62  ;;  %v6519_v18 = vand.u32 4294901760, %v53_v7  ;;  %vm2276_vm7 = vcmask 589312  }
  0x41   :  { %7846 = vst [vmem:[#allocation76_spill] sm:$0xff] %v6484_v49  ;;  %7849 = vst [vmem:[#allocation79_spill] sm:$0xff] %v6493_v41  ;;  %v7646_v15 = vand.u32 4294901760, %v6484_v49  ;;  %v335_v6 = vsub.f32 %v6476_v19, %v6493_v41  ;;  %v345_v61 = vsub.f32 %v6487_v58, %v6508_v10  ;;  %v6529_v41 = vsub.f32 %v6080_v20, %v7856_v23  ;;  %v54_v19 = vld [vmem:[#allocation2 + $0xb0] sm:$0xff]  ;;  %v55_v58 = vld [vmem:[#allocation2 + $0xb8] sm:$0xff] }
  0x42   :  { %7851 = vst [vmem:[#allocation81_spill] sm:$0xff] %v6497_v62  ;;  %7852 = vst [vmem:[#allocation82_spill] sm:$0xff] %v6508_v10  ;;  %v543_v48 = vand.u32 4294901760, %v542_v44  ;;  %4302 = vmatmul.mubr.f32.gmra.mrb[4].mxu0 %v6262_v57  ;;  %v6535_v22 = vand.u32 4294901760, %v6514_v17  ;;  %v6538_v44 = vand.u32 4294901760, %v6517_v60  ;;  %v7862_v57 = vand.u32 4294901760, %v6085_v21 }
  0x43   :  { %7853 = vst [vmem:[#allocation83_spill] sm:$0xff] %v6514_v17  ;;  %7854 = vst [vmem:[#allocation84_spill] sm:$0xff] %v6517_v60  ;;  %v549_v14 = vsub.f32 %v6484_v49, %v7646_v15  ;;  %v6532_v1 = vand.u32 4294901760, %v335_v6  ;;  %v6541_v15 = vsub.f32 %v53_v7, %v6519_v18  ;;  %4304 = vmatprep.mubr.f32.mxu0 %v6341_v35  ;;  %5206 = vmatpush3.bf16.msra.mxu0 %v6377_v3  ;;  %v57_v7 = vld [vmem:[#allocation2 + $0xc8] sm:$0xff]  ;;  %vm2283_vm8 = vcmask 654912  }
  0x44   :  { %7855 = vst [vmem:[#allocation85_spill] sm:$0xff] %v6519_v18  ;;  %7858 = vst [vmem:[#allocation87_spill] sm:$0xff] %v6535_v22  ;;  %v6545_v23 = vand.u32 4294901760, %v345_v61  ;;  %v6551_v10 = vsub.f32 %v6085_v21, %v7862_v57  ;;  %5208 = vmatprep.subr.bf16.mxu0 %v6457_v52  ;;  %v355_v35 = vsub.f32 %v6514_v17, %v6535_v22  ;;  %v7864_v21 = vand.u32 4294901760, %v6529_v41 }
  0x45   :  { %7857 = vst [vmem:[#allocation86_spill] sm:$0xff] %v6532_v1  ;;  %7859 = vst [vmem:[#allocation88_spill] sm:$0xff] %v6538_v44  ;;  %v550_v20 = vand.u32 4294901760, %v549_v14  ;;  %v365_v61 = vsub.f32 %v6517_v60, %v6538_v44  ;;  %v6561_v3 = vand.u32 4294901760, %v6541_v15  ;;  %v56_v14 = vld [vmem:[#allocation2 + $0xc0] sm:$0xff]  ;;  %v6567_v62 = vand.u32 4294901760, %v54_v19 }
  0x46   :  { %7860 = vst [vmem:[#allocation89_spill] sm:$0xff] %v6541_v15  ;;  %7861 = vst [vmem:[#allocation90_spill] sm:$0xff] %v6545_v23  ;;  %v556_v57 = vsub.f32 %v6529_v41, %v7864_v21  ;;  %v7671_v18 = vand.u32 4294901760, %v6551_v10  ;;  %4305 = vmatmul.mubr.f32.gmra.mrb[6].mxu0 %v6343_v32  ;;  %v6570_v22 = vand.u32 4294901760, %v355_v35  ;;  %v6576_v60 = vand.u32 4294901760, %v55_v58 }
  0x47   :  { %7863 = vst [vmem:[#allocation91_spill] sm:$0xff] %v6561_v3  ;;  %v5211_v6 = vpack.c.bf16 %v550_v20, %v543_v48  ;;  %7865 = vst [vmem:[#allocation92_spill] sm:$0xff] %v6567_v62  ;;  %v6572_v17 = vand.u32 4294901760, %v365_v61  ;;  %v375_v44 = vsub.f32 %v6541_v15, %v6561_v3  ;;  %4307 = vmatprep.mubr.f32.mxu0 %v6351_v11  ;;  %5210 = vmatpush3.bf16.msra.mxu0 %v6457_v52  ;;  %v58_v61 = vld [vmem:[#allocation2 + $0xd0] sm:$0xff]  ;;  %vm2290_vm9 = vcmask 720512  }
  0x48   :  { %7866 = vst [vmem:[#allocation93_spill] sm:$0xff] %v6570_v22  ;;  %7868 = vst [vmem:[#allocation95_spill] sm:$0xff] %v6576_v60  ;;  %v557_v48 = vand.u32 4294901760, %v556_v57  ;;  %v563_v20 = vsub.f32 %v6551_v10, %v7671_v18  ;;  %v6584_v21 = vsub.f32 %v54_v19, %v6567_v62  ;;  %v6586_v35 = vand.u32 4294901760, %v56_v14 }
  0x49   :  { %7867 = vst [vmem:[#allocation94_spill] sm:$0xff] %v6572_v17  ;;  %5212 = vmatprep.subr.bf16.mxu0 %v5211_v6  ;;  %v6590_v32 = vand.u32 4294901760, %v375_v44  ;;  %v6593_v11 = vsub.f32 %v55_v58, %v6576_v60  ;;  %v6595_v52 = vand.u32 4294901760, %v57_v7  ;;  %v7876_v18 = vand.u32 4294901760, %v6104_v26  ;;  %v59_v60 = vld [vmem:[#allocation2 + $0xd8] sm:$0xff] }
  0x4a   :  { %7869 = vst [vmem:[#allocation96_spill] sm:$0xff] %v6584_v21  ;;  %7870 = vst [vmem:[#allocation97_spill] sm:$0xff] %v6586_v35  ;;  %v564_v57 = vand.u32 4294901760, %v563_v20  ;;  %v6598_v3 = vand.u32 4294901760, %v6584_v21  ;;  %v6601_v19 = vsub.f32 %v56_v14, %v6586_v35  ;;  %4308 = vmatmul.mubr.f32.gmra.mrb[8].mxu0 %v6353_v42  ;;  %v7879_v14 = vand.u32 4294901760, %v6109_v27 }
  0x4b   :  { %7871 = vst [vmem:[#allocation98_spill] sm:$0xff] %v6590_v32  ;;  %7872 = vst [vmem:[#allocation99_spill] sm:$0xff] %v6593_v11  ;;  %v6606_v15 = vsub.f32 %v6104_v26, %v7876_v18  ;;  %v6612_v44 = vand.u32 4294901760, %v6593_v11  ;;  %v6615_v20 = vsub.f32 %v57_v7, %v6595_v52  ;;  %4310 = vmatprep.mubr.f32.mxu0 %v6391_v12  ;;  %5214 = vmatpush3.bf16.msra.mxu0 %v5211_v6  ;;  %v60_v6 = vld [vmem:[#allocation2 + $0xe0] sm:$0xff]  ;;  %vm2297_vm10 = vcmask 786112  }
  0x4c   :  { %7873 = vst [vmem:[#allocation100_spill] sm:$0xff] %v6595_v52  ;;  %7874 = vst [vmem:[#allocation101_spill] sm:$0xff] %v6598_v3  ;;  %v6620_v35 = vsub.f32 %v6109_v27, %v7879_v14  ;;  %v5215_v26 = vpack.c.bf16 %v564_v57, %v557_v48  ;;  %v385_v18 = vsub.f32 %v6584_v21, %v6598_v3  ;;  %v6626_v58 = vand.u32 4294901760, %v6601_v19 }
  0x4d   :  { %7875 = vst [vmem:[#allocation102_spill] sm:$0xff] %v6601_v19  ;;  %7877 = vst [vmem:[#allocation103_spill] sm:$0xff] %v6612_v44  ;;  %v7692_v42 = vand.u32 4294901760, %v6606_v15  ;;  %v395_v7 = vsub.f32 %v6593_v11, %v6612_v44  ;;  %v6632_v52 = vand.u32 4294901760, %v6615_v20  ;;  %v6635_v14 = vand.u32 4294901760, %v58_v61 }
  0x4e   :  { %7878 = vst [vmem:[#allocation104_spill] sm:$0xff] %v6615_v20  ;;  %7880 = vst [vmem:[#allocation105_spill] sm:$0xff] %v6626_v58  ;;  %5216 = vmatprep.subr.bf16.mxu0 %v5215_v26  ;;  %v6637_v48 = vand.u32 4294901760, %v385_v18  ;;  %v405_v57 = vsub.f32 %v6601_v19, %v6626_v58  ;;  %v6644_v3 = vand.u32 4294901760, %v59_v60  ;;  %4311 = vmatmul.mubr.f32.gmra.mrb[10].mxu0 %v6419_v56  ;;  %v7886_v11 = vand.u32 4294901760, %v6620_v35  ;;  %v61_v58 = vld [vmem:[#allocation2 + $0xe8] sm:$0xff] }
  0x4f   :  { %7881 = vst [vmem:[#allocation106_spill] sm:$0xff] %v6632_v52  ;;  %7882 = vst [vmem:[#allocation107_spill] sm:$0xff] %v6635_v14  ;;  %v570_v12 = vsub.f32 %v6606_v15, %v7692_v42  ;;  %v6647_v44 = vand.u32 4294901760, %v395_v7  ;;  %v415_v27 = vsub.f32 %v6615_v20, %v6632_v52  ;;  %v6655_v21 = vsub.f32 %v58_v61, %v6635_v14  ;;  %v62_v52 = vld [vmem:[#allocation2 + $0xf0] sm:$0xff] }
  0x50   :  { %7883 = vst [vmem:[#allocation108_spill] sm:$0xff] %v6637_v48  ;;  %7884 = vst [vmem:[#allocation109_spill] sm:$0xff] %v6644_v3  ;;  %v577_v18 = vsub.f32 %v6620_v35, %v7886_v11  ;;  %4313 = vmatprep.mubr.f32.mxu0 %v6440_v36  ;;  %5218 = vmatpush3.bf16.msra.mxu0 %v5215_v26  ;;  %v6658_v42 = vand.u32 4294901760, %v405_v57  ;;  %v6661_v7 = vsub.f32 %v59_v60, %v6644_v3  ;;  %vm2304_vm11 = vcmask 851712  }
  0x51   :  { %7885 = vst [vmem:[#allocation110_spill] sm:$0xff] %v6647_v44  ;;  %7887 = vst [vmem:[#allocation111_spill] sm:$0xff] %v6655_v21  ;;  %v571_v19 = vand.u32 4294901760, %v570_v12  ;;  %v6663_v56 = vand.u32 4294901760, %v60_v6  ;;  %v6667_v20 = vand.u32 4294901760, %v415_v27  ;;  %v6670_v61 = vand.u32 4294901760, %v6655_v21 }
  0x52   :  { %7888 = vst [vmem:[#allocation112_spill] sm:$0xff] %v6658_v42  ;;  %7889 = vst [vmem:[#allocation113_spill] sm:$0xff] %v6661_v7  ;;  %v578_v11 = vand.u32 4294901760, %v577_v18  ;;  %v6673_v36 = vand.u32 4294901760, %v6661_v7  ;;  %v6678_v12 = vand.u32 4294901760, %v61_v58  ;;  %v7896_v60 = vand.u32 4294901760, %v6114_v28  ;;  %4314 = vmatmul.mubr.f32.gmra.mrb[12].mxu0 %v6446_v29 }
  0x53   :  { %7890 = vst [vmem:[#allocation114_spill] sm:$0xff] %v6663_v56  ;;  %7891 = vst [vmem:[#allocation115_spill] sm:$0xff] %v6667_v20  ;;  %v6676_v26 = vsub.f32 %v60_v6, %v6663_v56  ;;  %v63_v27 = vld [vmem:[#allocation2 + $0xf8] sm:$0xff]  ;;  %v425_v14 = vsub.f32 %v6655_v21, %v6670_v61  ;;  %v7897_v6 = vand.u32 4294901760, %v6129_v33  ;;  %4316 = vmatprep.mubr.f32.mxu0 %v6471_v30  ;;  %vm2311_vm12 = vcmask 917312  }
  0x54   :  { %7892 = vst [vmem:[#allocation116_spill] sm:$0xff] %v6670_v61  ;;  %7893 = vst [vmem:[#allocation117_spill] sm:$0xff] %v6673_v36  ;;  %v6683_v57 = vsub.f32 %v6114_v28, %v7896_v60  ;;  %v5219_v3 = vpack.c.bf16 %v578_v11, %v571_v19  ;;  %v435_v28 = vsub.f32 %v6661_v7, %v6673_v36  ;;  %vm2318_vm13 = vcmask 982912  }
  0x55   :  { %7894 = vst [vmem:[#allocation118_spill] sm:$0xff] %v6676_v26  ;;  %7895 = vst [vmem:[#allocation119_spill] sm:$0xff] %v6678_v12  ;;  %v6693_v56 = vsub.f32 %v6129_v33, %v7897_v6  ;;  %v6699_v60 = vand.u32 4294901760, %v6676_v26  ;;  %v6702_v29 = vsub.f32 %v61_v58, %v6678_v12  ;;  %v6705_v11 = vand.u32 4294901760, %v425_v14 }
  0x56   :  { %v7715_v19 = vand.u32 4294901760, %v6683_v57  ;;  %5220 = vmatprep.subr.bf16.mxu0 %v5219_v3  ;;  %v6708_v33 = vand.u32 4294901760, %v62_v52  ;;  %v6710_v6 = vand.u32 4294901760, %v63_v27  ;;  %v6712_v30 = vand.u32 4294901760, %v435_v28  ;;  %4317 = vmatmul.mubr.f32.gmra.mrb[14].mxu0 %v6478_v43 }
  0x57   :  { %7898 = vst [vmem:[#allocation120_spill] sm:$0xff] %v6699_v60  ;;  %7899 = vst [vmem:[#allocation121_spill] sm:$0xff] %v6702_v29  ;;  %v7719_v18 = vand.u32 4294901760, %v6693_v56  ;;  %5222 = vmatpush3.bf16.msra.mxu0 %v5219_v3  ;;  %v445_v36 = vsub.f32 %v6676_v26, %v6699_v60  ;;  %v6717_v58 = vand.u32 4294901760, %v6702_v29  ;;  %v5227_v60 = vpack.c.bf16 %v6168_v50, %v6157_v46 }
  0x58   :  { %7900 = vst [vmem:[#allocation122_spill] sm:$0xff] %v6705_v11  ;;  %7901 = vst [vmem:[#allocation123_spill] sm:$0xff] %v6708_v33  ;;  %v584_v14 = vsub.f32 %v6683_v57, %v7715_v19  ;;  %v6727_v3 = vsub.f32 %v62_v52, %v6708_v33  ;;  %v6730_v28 = vsub.f32 %v63_v27, %v6710_v6  ;;  %4319 = vmatprep.mubr.f32.mxu0 %v6490_v31  ;;  %vm2325_vm14 = vcmask 1048512  }
  0x59   :  { %7902 = vst [vmem:[#allocation124_spill] sm:$0xff] %v6710_v6  ;;  %7903 = vst [vmem:[#allocation125_spill] sm:$0xff] %v6712_v30  ;;  %v591_v61 = vsub.f32 %v6693_v56, %v7719_v18  ;;  %v6737_v26 = vand.u32 4294901760, %v445_v36  ;;  %v455_v43 = vsub.f32 %v6702_v29, %v6717_v58  ;;  %v5231_v21 = vpack.c.bf16 %v6252_v25, %v6240_v0 }
  0x5a   :  { %7904 = vst [vmem:[#allocation126_spill] sm:$0xff] %v6717_v58  ;;  %7905 = vst [vmem:[#allocation127_spill] sm:$0xff] %v6727_v3  ;;  %v585_v18 = vand.u32 4294901760, %v584_v14  ;;  %v6742_v52 = vand.u32 4294901760, %v6727_v3  ;;  %v6745_v27 = vand.u32 4294901760, %v6730_v28  ;;  %v5235_v36 = vpack.c.bf16 %v6311_v37, %v6299_v40  ;;  %4320 = vmatmul.mubr.f32.gmra.mrb[16].mxu0 %v6532_v1 }
  0x5b   :  { %7906 = vst [vmem:[#allocation128_spill] sm:$0xff] %v6730_v28  ;;  %7907 = vst [vmem:[#allocation129_spill] sm:$0xff] %v6737_v26  ;;  %v592_v7 = vand.u32 4294901760, %v591_v61  ;;  %v6749_v31 = vand.u32 4294901760, %v455_v43  ;;  %v5239_v19 = vpack.c.bf16 %v6388_v47, %v6374_v63  ;;  %v5243_v61 = vpack.c.bf16 %v6484_v49, %v6464_v9  ;;  %4322 = vmatprep.mubr.f32.mxu0 %v6545_v23  ;;  %v7924_v47 = vld [vmem:[#allocation109_spill] sm:$0xff]  ;;  %v7937_v23 = vld [vmem:[#allocation40_spill] sm:$0xff] }
  0x5c   :  { %7908 = vst [vmem:[#allocation130_spill] sm:$0xff] %v6742_v52  ;;  %7909 = vst [vmem:[#allocation131_spill] sm:$0xff] %v6745_v27  ;;  %v465_v58 = vsub.f32 %v6727_v3, %v6742_v52  ;;  %v475_v25 = vsub.f32 %v6730_v28, %v6745_v27  ;;  %v5247_v43 = vpack.c.bf16 %v6551_v10, %v6529_v41  ;;  %vm2406_vm15 = vcmask 1041409  }
  0x5d   :  { %7910 = vst [vmem:[#allocation132_spill] sm:$0xff] %v6749_v31  ;;  %v5223_v14 = vpack.c.bf16 %v592_v7, %v585_v18  ;;  %v5251_v49 = vpack.c.bf16 %v6620_v35, %v6606_v15  ;;  %v7922_v18 = vld [vmem:[#allocation100_spill] sm:$0xff] }
  0x5e   :  { %v6769_v1 = vand.u32 4294901760, %v465_v58  ;;  %v6771_v7 = vand.u32 4294901760, %v475_v25  ;;  %4323 = vmatmul.mubr.f32.gmra.mrb[18].mxu0 %v6570_v22  ;;  %v5255_v25 = vpack.c.bf16 %v6693_v56, %v6683_v57  ;;  %v7916_v58 = vld [vmem:[#allocation71_spill] sm:$0xff] }
  0x5f   :  { %5224 = vmatprep.subr.bf16.mxu0 %v5223_v14  ;;  %4325 = vmatprep.mubr.f32.mxu0 %v6572_v17  ;;  %v7935_v17 = vld [vmem:[#allocation14_spill] sm:$0xff]  ;;  %v7938_v22 = vld [vmem:[#allocation15_spill] sm:$0xff] }
  0x60   :  { %7911 = vst [vmem:[#allocation133_spill] sm:$0xff] %v6769_v1  ;;  %7912 = vst [vmem:[#allocation134_spill] sm:$0xff] %v6771_v7  ;;  %5226 = vmatpush3.bf16.msra.mxu0 %v5223_v14  ;;  %v7919_v14 = vld [vmem:[#allocation85_spill] sm:$0xff] }
  0x61   :  { %5228 = vmatprep.subr.bf16.mxu0 %v5227_v60 }
  0x62   :  { %4326 = vmatmul.mubr.f32.gmra.mrb[20].mxu0 %v6590_v32  ;;  %v7936_v32 = vld [vmem:[#allocation39_spill] sm:$0xff] }
  0x63   :  { %4328 = vmatprep.mubr.f32.mxu0 %v6637_v48  ;;  %v7933_v48 = vld [vmem:[#allocation27_spill] sm:$0xff] }
  0x66   :  { %4329 = vmatmul.mubr.f32.gmra.mrb[22].mxu0 %v6647_v44  ;;  %v7934_v44 = vld [vmem:[#allocation38_spill] sm:$0xff] }
  0x67   :  { %4331 = vmatprep.mubr.f32.mxu0 %v6658_v42  ;;  %v7931_v42 = vld [vmem:[#allocation25_spill] sm:$0xff] }
  0x6a   :  { %4332 = vmatmul.mubr.f32.gmra.mrb[24].mxu0 %v6667_v20  ;;  %v7932_v20 = vld [vmem:[#allocation13_spill] sm:$0xff] }
  0x6b   :  { %4334 = vmatprep.mubr.f32.mxu0 %v6705_v11  ;;  %v7929_v11 = vld [vmem:[#allocation12_spill] sm:$0xff] }
  0x6e   :  { %4335 = vmatmul.mubr.f32.gmra.mrb[26].mxu0 %v6712_v30  ;;  %v7930_v30 = vld [vmem:[#allocation24_spill] sm:$0xff] }
  0x6f   :  { %4337 = vmatprep.mubr.f32.mxu0 %v6737_v26  ;;  %v7927_v26 = vld [vmem:[#allocation20_spill] sm:$0xff] }
  0x72   :  { %4338 = vmatmul.mubr.f32.gmra.mrb[28].mxu0 %v6749_v31  ;;  %v7928_v31 = vld [vmem:[#allocation22_spill] sm:$0xff] }
  0x73   :  { %4340 = vmatprep.mubr.f32.mxu0 %v6769_v1  ;;  %v7925_v1 = vld [vmem:[#allocation114_spill] sm:$0xff] }
  0x76   :  { %4341 = vmatmul.mubr.f32.gmra.mrb[30].mxu0 %v6771_v7  ;;  %v7926_v7 = vld [vmem:[#allocation19_spill] sm:$0xff] }
  0x77   :  { %4375 = vmatprep.mubr.f32.mxu0 %v6140_v39 }
  0x7a   :  { %4376 = vmatmul.mubr.f32.vlgmr.msra.gmra.mrb[0].mxu0 %v6155_v45 }
  0x7b   :  { %5230 = vmatpush3.bf16.msra.mxu0 %v5227_v60  ;;  %4378 = vmatprep.mubr.f32.mxu0 %v6170_v51  ;;  %v7914_v60 = vld [vmem:[#allocation62_spill] sm:$0xff] }
  0x7c   :  { %5232 = vmatprep.subr.bf16.mxu0 %v5231_v21 }
  0x7e   :  { %4379 = vmatmul.mubr.f32.gmra.mrb[2].mxu0 %v6176_v54 }
  0x7f   :  { %4381 = vmatprep.mubr.f32.mxu0 %v6178_v55  ;;  %5234 = vmatpush3.bf16.msra.mxu0 %v5231_v21  ;;  %v7913_v21 = vld [vmem:[#allocation59_spill] sm:$0xff] }
  0x80   :  { %5236 = vmatprep.subr.bf16.mxu0 %v5235_v36 }
  0x82   :  { %4382 = vmatmul.mubr.f32.gmra.mrb[4].mxu0 %v6188_v59 }
  0x83   :  { %4384 = vmatprep.mubr.f32.mxu0 %v6265_v16  ;;  %5238 = vmatpush3.bf16.msra.mxu0 %v5235_v36  ;;  %v7917_v36 = vld [vmem:[#allocation72_spill] sm:$0xff] }
  0x84   :  { %5240 = vmatprep.subr.bf16.mxu0 %v5239_v19 }
  0x86   :  { %4385 = vmatmul.mubr.f32.gmra.mrb[6].mxu0 %v6267_v5 }
  0x87   :  { %4387 = vmatprep.mubr.f32.mxu0 %v6275_v38  ;;  %5242 = vmatpush3.bf16.msra.mxu0 %v5239_v19  ;;  %v7915_v19 = vld [vmem:[#allocation11_spill] sm:$0xff] }
  0x88   :  { %5244 = vmatprep.subr.bf16.mxu0 %v5243_v61 }
  0x8a   :  { %4388 = vmatmul.mubr.f32.gmra.mrb[8].mxu0 %v6277_v2 }
  0x8b   :  { %4390 = vmatprep.mubr.f32.mxu0 %v6321_v34  ;;  %5246 = vmatpush3.bf16.msra.mxu0 %v5243_v61  ;;  %v7918_v61 = vld [vmem:[#allocation81_spill] sm:$0xff] }
  0x8c   :  { %5248 = vmatprep.subr.bf16.mxu0 %v5247_v43 }
  0x8e   :  { %4391 = vmatmul.mubr.f32.gmra.mrb[10].mxu0 %v6348_v53 }
  0x8f   :  { %4393 = vmatprep.mubr.f32.mxu0 %v6363_v24  ;;  %5250 = vmatpush3.bf16.msra.mxu0 %v5247_v43  ;;  %v7921_v43 = vld [vmem:[#allocation97_spill] sm:$0xff] }
  0x90   :  { %5252 = vmatprep.subr.bf16.mxu0 %v5251_v49 }
  0x92   :  { %4394 = vmatmul.mubr.f32.gmra.mrb[12].mxu0 %v6369_v4 }
  0x93   :  { %4396 = vmatprep.mubr.f32.mxu0 %v6397_v8  ;;  %5254 = vmatpush3.bf16.msra.mxu0 %v5251_v49  ;;  %v7920_v49 = vld [vmem:[#allocation95_spill] sm:$0xff] }
  0x94   :  { %5256 = vmatprep.subr.bf16.mxu0 %v5255_v25 }
  0x96   :  { %4397 = vmatmul.mubr.f32.gmra.mrb[14].mxu0 %v7913_v21 }
  0x97   :  { %4399 = vmatprep.mubr.f32.mxu0 %v7914_v60  ;;  %5258 = vmatpush3.bf16.msra.mxu0 %v5255_v25  ;;  %v7923_v25 = vld [vmem:[#allocation107_spill] sm:$0xff] }
  0x98   :  { %5260 = vmatprep.subr.bf16.mxu0 %v7915_v19 }
  0x9a   :  { %4400 = vmatmul.mubr.f32.gmra.mrb[16].mxu0 %v7916_v58 }
  0x9b   :  { %4402 = vmatprep.mubr.f32.mxu0 %v7917_v36 }
  0x9e   :  { %4403 = vmatmul.mubr.f32.gmra.mrb[18].mxu0 %v6495_v13 }
  0x9f   :  { %4405 = vmatprep.mubr.f32.mxu0 %v7918_v61 }
  0xa2   :  { %4406 = vmatmul.mubr.f32.gmra.mrb[20].mxu0 %v7919_v14 }
  0xa3   :  { %4408 = vmatprep.mubr.f32.mxu0 %v6567_v62 }
  0xa6   :  { %4409 = vmatmul.mubr.f32.gmra.mrb[22].mxu0 %v7920_v49 }
  0xa7   :  { %4411 = vmatprep.mubr.f32.mxu0 %v7921_v43 }
  0xaa   :  { %4412 = vmatmul.mubr.f32.gmra.mrb[24].mxu0 %v7922_v18 }
  0xab   :  { %4414 = vmatprep.mubr.f32.mxu0 %v7923_v25 }
  0xae   :  { %4415 = vmatmul.mubr.f32.gmra.mrb[26].mxu0 %v7924_v47 }
  0xaf   :  { %4417 = vmatprep.mubr.f32.mxu0 %v7925_v1  ;;  %v7956_v1 = vld [vmem:[#allocation89_spill] sm:$0xff] }
  0xb2   :  { %4418 = vmatmul.mubr.f32.gmra.mrb[28].mxu0 %v6678_v12  ;;  %v7955_v12 = vld [vmem:[#allocation84_spill] sm:$0xff] }
  0xb3   :  { %4420 = vmatprep.mubr.f32.mxu0 %v6708_v33  ;;  %v7952_v33 = vld [vmem:[#allocation74_spill] sm:$0xff] }
  0xb6   :  { %4421 = vmatmul.mubr.f32.gmra.mrb[30].mxu0 %v6710_v6 }
  0xb7   :  { %4455 = vmatprep.mubr.f32.mxu0 %v7926_v7  ;;  %v7949_v7 = vand.u32 4294901760, %v6168_v50  ;;  %v7959_v50 = vld [vmem:[#allocation102_spill] sm:$0xff] }
  0xba   :  { %4456 = vmatmul.mubr.f32.vlgmr.msra.gmra.mrb[0].mxu0 %v7927_v26  ;;  %v7946_v26 = vld [vmem:[#allocation61_spill] sm:$0xff] }
  0xbb   :  { %5262 = vmatpush3.bf16.msra.mxu0 %v7915_v19  ;;  %4458 = vmatprep.mubr.f32.mxu0 %v7928_v31  ;;  %v7943_v31 = vld [vmem:[#allocation54_spill] sm:$0xff] }
  0xbc   :  { %5264 = vmatprep.subr.bf16.mxu0 %v7929_v11 }
  0xbe   :  { %4459 = vmatmul.mubr.f32.gmra.mrb[2].mxu0 %v7930_v30  ;;  %v7940_v30 = vld [vmem:[#allocation46_spill] sm:$0xff] }
  0xbf   :  { %4461 = vmatprep.mubr.f32.mxu0 %v7931_v42  ;;  %5266 = vmatpush3.bf16.msra.mxu0 %v7929_v11  ;;  %v7939_v42 = vld [vmem:[#allocation41_spill] sm:$0xff] }
  0xc0   :  { %5268 = vmatprep.subr.bf16.mxu0 %v7932_v20 }
  0xc2   :  { %4462 = vmatmul.mubr.f32.gmra.mrb[4].mxu0 %v7933_v48  ;;  %v7941_v48 = vld [vmem:[#allocation16_spill] sm:$0xff] }
  0xc3   :  { %4464 = vmatprep.mubr.f32.mxu0 %v7934_v44  ;;  %5270 = vmatpush3.bf16.msra.mxu0 %v7932_v20  ;;  %v7942_v44 = vld [vmem:[#allocation52_spill] sm:$0xff] }
  0xc4   :  { %5272 = vmatprep.subr.bf16.mxu0 %v7935_v17 }
  0xc6   :  { %4465 = vmatmul.mubr.f32.gmra.mrb[6].mxu0 %v7936_v32  ;;  %v7944_v32 = vld [vmem:[#allocation17_spill] sm:$0xff] }
  0xc7   :  { %4467 = vmatprep.mubr.f32.mxu0 %v7937_v23  ;;  %5274 = vmatpush3.bf16.msra.mxu0 %v7935_v17  ;;  %v7945_v23 = vld [vmem:[#allocation57_spill] sm:$0xff] }
  0xc8   :  { %5276 = vmatprep.subr.bf16.mxu0 %v7938_v22 }
  0xca   :  { %4468 = vmatmul.mubr.f32.gmra.mrb[8].mxu0 %v7939_v42  ;;  %v7947_v42 = vld [vmem:[#allocation18_spill] sm:$0xff] }
  0xcb   :  { %4470 = vmatprep.mubr.f32.mxu0 %v7940_v30  ;;  %5278 = vmatpush3.bf16.msra.mxu0 %v7938_v22  ;;  %v7948_v30 = vand.u32 4294901760, %v6157_v46  ;;  %v7957_v46 = vld [vmem:[#allocation96_spill] sm:$0xff] }
  0xcc   :  { %5280 = vmatprep.subr.bf16.mxu0 %v7941_v48 }
  0xcd   :  { %v5291_v6 = vpack.c.bf16 %v7949_v7, %v7948_v30  ;;  %v7958_v30 = vld [vmem:[#allocation99_spill] sm:$0xff]  ;;  %v7960_v7 = vld [vmem:[#allocation104_spill] sm:$0xff] }
  0xce   :  { %4471 = vmatmul.mubr.f32.gmra.mrb[10].mxu0 %v7942_v44  ;;  %v7950_v44 = vld [vmem:[#allocation64_spill] sm:$0xff] }
  0xcf   :  { %4473 = vmatprep.mubr.f32.mxu0 %v7943_v31  ;;  %5282 = vmatpush3.bf16.msra.mxu0 %v7941_v48  ;;  %v7951_v31 = vld [vmem:[#allocation66_spill] sm:$0xff] }
  0xd0   :  { %5284 = vmatprep.subr.bf16.mxu0 %v7944_v32 }
  0xd2   :  { %4474 = vmatmul.mubr.f32.gmra.mrb[12].mxu0 %v7945_v23  ;;  %v7953_v23 = vld [vmem:[#allocation77_spill] sm:$0xff] }
  0xd3   :  { %4476 = vmatprep.mubr.f32.mxu0 %v7946_v26  ;;  %5286 = vmatpush3.bf16.msra.mxu0 %v7944_v32  ;;  %v7954_v26 = vld [vmem:[#allocation83_spill] sm:$0xff] }
  0xd4   :  { %5288 = vmatprep.subr.bf16.mxu0 %v7947_v42 }
  0xd6   :  { %4477 = vmatmul.mubr.f32.gmra.mrb[14].mxu0 %v7950_v44  ;;  %v7962_v44 = vld [vmem:[#allocation113_spill] sm:$0xff] }
  0xd7   :  { %4479 = vmatprep.mubr.f32.mxu0 %v7951_v31  ;;  %5290 = vmatpush3.bf16.msra.mxu0 %v7947_v42  ;;  %v7961_v31 = vld [vmem:[#allocation111_spill] sm:$0xff] }
  0xd8   :  { %5292 = vmatprep.subr.bf16.mxu0 %v5291_v6 }
  0xda   :  { %4480 = vmatmul.mubr.f32.gmra.mrb[16].mxu0 %v7952_v33  ;;  %v7963_v33 = vld [vmem:[#allocation118_spill] sm:$0xff] }
  0xdb   :  { %4482 = vmatprep.mubr.f32.mxu0 %v7953_v23  ;;  %v7982_v23 = vld [vmem:[#allocation43_spill] sm:$0xff] }
  0xde   :  { %4483 = vmatmul.mubr.f32.gmra.mrb[18].mxu0 %v7954_v26  ;;  %v7978_v26 = vld [vmem:[#allocation42_spill] sm:$0xff] }
  0xdf   :  { %4485 = vmatprep.mubr.f32.mxu0 %v7955_v12 }
  0xe2   :  { %4486 = vmatmul.mubr.f32.gmra.mrb[20].mxu0 %v7956_v1  ;;  %v7964_v1 = vld [vmem:[#allocation21_spill] sm:$0xff] }
  0xe3   :  { %4488 = vmatprep.mubr.f32.mxu0 %v7957_v46  ;;  %v7966_v46 = vld [vmem:[#allocation34_spill] sm:$0xff] }
  0xe6   :  { %4489 = vmatmul.mubr.f32.gmra.mrb[22].mxu0 %v7958_v30  ;;  %v7965_v30 = vand.u32 4294901760, %v6240_v0  ;;  %v7974_v0 = vand.u32 4294901760, %v6374_v63  ;;  %v7984_v63 = vand.u32 4294901760, %v6529_v41  ;;  %v7992_v41 = vand.u32 4294901760, %v6683_v57  ;;  %v8000_v57 = vld [vmem:[#allocation87_spill] sm:$0xff] }
  0xe7   :  { %4491 = vmatprep.mubr.f32.mxu0 %v7959_v50  ;;  %v7967_v50 = vand.u32 4294901760, %v7966_v46  ;;  %v7975_v46 = vld [vmem:[#allocation55_spill] sm:$0xff] }
  0xe9   :  { %v5295_v12 = vpack.c.bf16 %v7967_v50, %v7965_v30  ;;  %v7976_v30 = vand.u32 4294901760, %v7975_v46 }
  0xea   :  { %4492 = vmatmul.mubr.f32.gmra.mrb[24].mxu0 %v7960_v7  ;;  %v7968_v7 = vld [vmem:[#allocation23_spill] sm:$0xff] }
  0xeb   :  { %4494 = vmatprep.mubr.f32.mxu0 %v7961_v31  ;;  %v7969_v31 = vld [vmem:[#allocation26_spill] sm:$0xff]  ;;  %v5303_v50 = vpack.c.bf16 %v7976_v30, %v7974_v0  ;;  %v7985_v0 = vand.u32 4294901760, %v6551_v10  ;;  %v7986_v30 = vld [vmem:[#allocation45_spill] sm:$0xff]  ;;  %v7993_v10 = vand.u32 4294901760, %v6693_v56  ;;  %v8001_v56 = vld [vmem:[#allocation88_spill] sm:$0xff] }
  0xed   :  { %v5311_v46 = vpack.c.bf16 %v7985_v0, %v7984_v63  ;;  %v5319_v63 = vpack.c.bf16 %v7993_v10, %v7992_v41  ;;  %v7994_v0 = vld [vmem:[#allocation60_spill] sm:$0xff]  ;;  %v8003_v41 = vld [vmem:[#allocation101_spill] sm:$0xff] }
  0xee   :  { %4495 = vmatmul.mubr.f32.gmra.mrb[26].mxu0 %v7962_v44  ;;  %v7972_v44 = vld [vmem:[#allocation28_spill] sm:$0xff]  ;;  %v8005_v10 = vld [vmem:[#allocation105_spill] sm:$0xff] }
  0xef   :  { %4497 = vmatprep.mubr.f32.mxu0 %v7963_v33  ;;  %v7970_v33 = vand.u32 4294901760, %v6299_v40  ;;  %v7979_v40 = vand.u32 4294901760, %v6464_v9  ;;  %v7988_v9 = vand.u32 4294901760, %v6606_v15  ;;  %v7996_v15 = vld [vmem:[#allocation68_spill] sm:$0xff] }
  0xf2   :  { %4498 = vmatmul.mubr.f32.gmra.mrb[28].mxu0 %v6702_v29  ;;  %v7971_v29 = vand.u32 4294901760, %v6311_v37  ;;  %v7980_v37 = vld [vmem:[#allocation76_spill] sm:$0xff] }
  0xf3   :  { %4500 = vmatprep.mubr.f32.mxu0 %v6727_v3 }
  0xf4   :  { %v5299_v3 = vpack.c.bf16 %v7971_v29, %v7970_v33  ;;  %v7981_v29 = vand.u32 4294901760, %v7980_v37 }
  0xf6   :  { %4501 = vmatmul.mubr.f32.gmra.mrb[30].mxu0 %v6730_v28  ;;  %v7973_v28 = vld [vmem:[#allocation29_spill] sm:$0xff]  ;;  %v5307_v33 = vpack.c.bf16 %v7981_v29, %v7979_v40  ;;  %v7989_v40 = vand.u32 4294901760, %v6620_v35  ;;  %v7997_v35 = vld [vmem:[#allocation70_spill] sm:$0xff] }
  0xf7   :  { %4535 = vmatprep.mubr.f32.mxu0 %v7964_v1  ;;  %v7990_v29 = vld [vmem:[#allocation53_spill] sm:$0xff] }
  0xf8   :  { %v5315_v37 = vpack.c.bf16 %v7989_v40, %v7988_v9  ;;  %v7999_v9 = vld [vmem:[#allocation82_spill] sm:$0xff]  ;;  %v8002_v40 = vld [vmem:[#allocation91_spill] sm:$0xff] }
  0xfa   :  { %4536 = vmatmul.mubr.f32.vlgmr.msra.gmra.mrb[0].mxu0 %v7968_v7 }
  0xfb   :  { %5294 = vmatpush3.bf16.msra.mxu0 %v5291_v6  ;;  %4538 = vmatprep.mubr.f32.mxu0 %v7969_v31  ;;  %v7977_v6 = vld [vmem:[#allocation31_spill] sm:$0xff] }
  0xfc   :  { %5296 = vmatprep.subr.bf16.mxu0 %v5295_v12 }
  0xfe   :  { %4539 = vmatmul.mubr.f32.gmra.mrb[2].mxu0 %v7972_v44 }
  0xff   :  { %4541 = vmatprep.mubr.f32.mxu0 %v7973_v28  ;;  %5298 = vmatpush3.bf16.msra.mxu0 %v5295_v12  ;;  %v7983_v12 = vld [vmem:[#allocation44_spill] sm:$0xff] }
 0x100   :  { %5300 = vmatprep.subr.bf16.mxu0 %v5299_v3 }
 0x102   :  { %4542 = vmatmul.mubr.f32.gmra.mrb[4].mxu0 %v7977_v6 }
 0x103   :  { %4544 = vmatprep.mubr.f32.mxu0 %v7978_v26  ;;  %5302 = vmatpush3.bf16.msra.mxu0 %v5299_v3  ;;  %v7987_v3 = vld [vmem:[#allocation51_spill] sm:$0xff] }
 0x104   :  { %5304 = vmatprep.subr.bf16.mxu0 %v5303_v50 }
 0x106   :  { %4545 = vmatmul.mubr.f32.gmra.mrb[6].mxu0 %v7982_v23 }
 0x107   :  { %4547 = vmatprep.mubr.f32.mxu0 %v7983_v12  ;;  %5306 = vmatpush3.bf16.msra.mxu0 %v5303_v50  ;;  %v7991_v50 = vld [vmem:[#allocation58_spill] sm:$0xff] }
 0x108   :  { %5308 = vmatprep.subr.bf16.mxu0 %v5307_v33 }
 0x10a   :  { %4548 = vmatmul.mubr.f32.gmra.mrb[8].mxu0 %v7986_v30 }
 0x10b   :  { %4550 = vmatprep.mubr.f32.mxu0 %v7987_v3  ;;  %5310 = vmatpush3.bf16.msra.mxu0 %v5307_v33  ;;  %v7995_v33 = vld [vmem:[#allocation65_spill] sm:$0xff] }
 0x10c   :  { %5312 = vmatprep.subr.bf16.mxu0 %v5311_v46 }
 0x10e   :  { %4551 = vmatmul.mubr.f32.gmra.mrb[10].mxu0 %v7990_v29 }
 0x10f   :  { %4553 = vmatprep.mubr.f32.mxu0 %v7991_v50  ;;  %5314 = vmatpush3.bf16.msra.mxu0 %v5311_v46  ;;  %v7998_v46 = vld [vmem:[#allocation79_spill] sm:$0xff] }
 0x110   :  { %5316 = vmatprep.subr.bf16.mxu0 %v5315_v37 }
 0x112   :  { %4554 = vmatmul.mubr.f32.gmra.mrb[12].mxu0 %v7994_v0 }
 0x113   :  { %4556 = vmatprep.mubr.f32.mxu0 %v7995_v33  ;;  %5318 = vmatpush3.bf16.msra.mxu0 %v5315_v37  ;;  %v8004_v37 = vld [vmem:[#allocation103_spill] sm:$0xff] }
 0x114   :  { %5320 = vmatprep.subr.bf16.mxu0 %v5319_v63 }
 0x116   :  { %4557 = vmatmul.mubr.f32.gmra.mrb[14].mxu0 %v7996_v15  ;;  %v8008_v15 = vld [vmem:[#allocation117_spill] sm:$0xff] }
 0x117   :  { %4559 = vmatprep.mubr.f32.mxu0 %v7997_v35  ;;  %5322 = vmatpush3.bf16.msra.mxu0 %v5319_v63  ;;  %v8006_v35 = vld [vmem:[#allocation106_spill] sm:$0xff]  ;;  %v8007_v63 = vld [vmem:[#allocation116_spill] sm:$0xff] }
 0x118   :  { %5324 = vmatprep.subr.bf16.mxu0 %v7915_v19 }
 0x11a   :  { %4560 = vmatmul.mubr.f32.gmra.mrb[16].mxu0 %v7998_v46  ;;  %v8009_v46 = vld [vmem:[#allocation120_spill] sm:$0xff] }
 0x11b   :  { %4562 = vmatprep.mubr.f32.mxu0 %v7999_v9  ;;  %v8010_v9 = vld [vmem:[#allocation126_spill] sm:$0xff] }
 0x11e   :  { %4563 = vmatmul.mubr.f32.gmra.mrb[18].mxu0 %v8000_v57 }
 0x11f   :  { %4565 = vmatprep.mubr.f32.mxu0 %v8001_v56 }
 0x122   :  { %4566 = vmatmul.mubr.f32.gmra.mrb[20].mxu0 %v8002_v40 }
 0x123   :  { %4568 = vmatprep.mubr.f32.mxu0 %v8003_v41 }
 0x126   :  { %4569 = vmatmul.mubr.f32.gmra.mrb[22].mxu0 %v8004_v37 }
 0x127   :  { %4571 = vmatprep.mubr.f32.mxu0 %v8005_v10 }
 0x12a   :  { %4572 = vmatmul.mubr.f32.gmra.mrb[24].mxu0 %v8006_v35 }
 0x12b   :  { %4574 = vmatprep.mubr.f32.mxu0 %v8007_v63 }
 0x12e   :  { %4575 = vmatmul.mubr.f32.gmra.mrb[26].mxu0 %v8008_v15 }
 0x12f   :  { %4577 = vmatprep.mubr.f32.mxu0 %v8009_v46 }
 0x132   :  { %4578 = vmatmul.mubr.f32.gmra.mrb[28].mxu0 %v8010_v9 }
 0x133   :  { %4580 = vmatprep.mubr.f32.mxu0 %v6742_v52 }
 0x136   :  { %4581 = vmatmul.mubr.f32.gmra.mrb[30].mxu0 %v6745_v27 }
 0x137   :  { %4615 = vmatprep.mubr.f32.mxu0 %v6140_v39 }
 0x13a   :  { %4616 = vmatmul.mubr.f32.vlgmr.msra.gmra.mrb[0].mxu0 %v6155_v45 }
 0x13b   :  { %5326 = vmatpush3.bf16.msra.mxu0 %v7915_v19  ;;  %4618 = vmatprep.mubr.f32.mxu0 %v6170_v51 }
 0x13c   :  { %5328 = vmatprep.subr.bf16.mxu0 %v7929_v11 }
 0x13e   :  { %4619 = vmatmul.mubr.f32.gmra.mrb[2].mxu0 %v6176_v54 }
 0x13f   :  { %4621 = vmatprep.mubr.f32.mxu0 %v6178_v55  ;;  %5330 = vmatpush3.bf16.msra.mxu0 %v7929_v11 }
 0x140   :  { %5332 = vmatprep.subr.bf16.mxu0 %v7932_v20 }
 0x142   :  { %4622 = vmatmul.mubr.f32.gmra.mrb[4].mxu0 %v6188_v59 }
 0x143   :  { %4624 = vmatprep.mubr.f32.mxu0 %v6265_v16  ;;  %5334 = vmatpush3.bf16.msra.mxu0 %v7932_v20  ;;  %v5978_v20 = vmov 0  }
 0x144   :  { %5336 = vmatprep.subr.bf16.mxu0 %v7935_v17  ;;  %5833 = vset.pattern.permute.xlu0 %v5978_v20 }
 0x145   :  { %5834 = vset.pattern.permute.xlu1 %v5978_v20 }
 0x146   :  { %4625 = vmatmul.mubr.f32.gmra.mrb[6].mxu0 %v6267_v5 }
 0x147   :  { %4627 = vmatprep.mubr.f32.mxu0 %v6275_v38  ;;  %5338 = vmatpush3.bf16.msra.mxu0 %v7935_v17  ;;  %v8011_v17 = vld [vmem:[#allocation114_spill] sm:$0xff] }
 0x148   :  { %5340 = vmatprep.subr.bf16.mxu0 %v7938_v22 }
 0x14a   :  { %4628 = vmatmul.mubr.f32.gmra.mrb[8].mxu0 %v6277_v2 }
 0x14b   :  { %4630 = vmatprep.mubr.f32.mxu0 %v6321_v34  ;;  %5342 = vmatpush3.bf16.msra.mxu0 %v7938_v22  ;;  %v8014_v22 = vld [vmem:[#allocation124_spill] sm:$0xff] }
 0x14c   :  { %5344 = vmatprep.subr.bf16.mxu0 %v7941_v48 }
 0x14e   :  { %4631 = vmatmul.mubr.f32.gmra.mrb[10].mxu0 %v6348_v53 }
 0x14f   :  { %4633 = vmatprep.mubr.f32.mxu0 %v6363_v24  ;;  %5346 = vmatpush3.bf16.msra.mxu0 %v7941_v48 }
 0x150   :  { %5348 = vmatprep.subr.bf16.mxu0 %v7944_v32 }
 0x152   :  { %4634 = vmatmul.mubr.f32.gmra.mrb[12].mxu0 %v6369_v4 }
 0x153   :  { %4636 = vmatprep.mubr.f32.mxu0 %v6397_v8  ;;  %5350 = vmatpush3.bf16.msra.mxu0 %v7944_v32  ;;  %v8012_v32 = vld [vmem:[#allocation119_spill] sm:$0xff] }
 0x154   :  { %5352 = vmatprep.subr.bf16.mxu0 %v7947_v42 }
 0x156   :  { %4637 = vmatmul.mubr.f32.gmra.mrb[14].mxu0 %v7913_v21 }
 0x157   :  { %4639 = vmatprep.mubr.f32.mxu0 %v7914_v60  ;;  %5354 = vmatpush3.bf16.msra.mxu0 %v7947_v42  ;;  %v8013_v42 = vld [vmem:[#allocation123_spill] sm:$0xff] }
 0x15a   :  { %4640 = vmatmul.mubr.f32.gmra.mrb[16].mxu0 %v7916_v58 }
 0x15b   :  { %4642 = vmatprep.mubr.f32.mxu0 %v7917_v36 }
 0x15e   :  { %4643 = vmatmul.mubr.f32.gmra.mrb[18].mxu0 %v6495_v13 }
 0x15f   :  { %4645 = vmatprep.mubr.f32.mxu0 %v7918_v61 }
 0x162   :  { %4646 = vmatmul.mubr.f32.gmra.mrb[20].mxu0 %v7919_v14 }
 0x163   :  { %4648 = vmatprep.mubr.f32.mxu0 %v6567_v62 }
 0x166   :  { %4649 = vmatmul.mubr.f32.gmra.mrb[22].mxu0 %v7920_v49 }
 0x167   :  { %4651 = vmatprep.mubr.f32.mxu0 %v7921_v43 }
 0x16a   :  { %4652 = vmatmul.mubr.f32.gmra.mrb[24].mxu0 %v7922_v18 }
 0x16b   :  { %4654 = vmatprep.mubr.f32.mxu0 %v7923_v25 }
 0x16e   :  { %4655 = vmatmul.mubr.f32.gmra.mrb[26].mxu0 %v7924_v47 }
 0x16f   :  { %4657 = vmatprep.mubr.f32.mxu0 %v8011_v17 }
 0x172   :  { %4658 = vmatmul.mubr.f32.gmra.mrb[28].mxu0 %v8012_v32 }
 0x173   :  { %4660 = vmatprep.mubr.f32.mxu0 %v8013_v42 }
 0x176   :  { %4661 = vmatmul.mubr.f32.gmra.mrb[30].mxu0 %v8014_v22 }
 0x177   :  { %4695 = vmatprep.mubr.f32.mxu0 %v6140_v39 }
 0x17a   :  { %4696 = vmatmul.mubr.f32.vlgmr.msra.gmra.mrb[0].mxu0 %v6155_v45 }
 0x17b   :  { %4698 = vmatprep.mubr.f32.mxu0 %v6170_v51 }
 0x17e   :  { %4699 = vmatmul.mubr.f32.gmra.mrb[2].mxu0 %v6176_v54 }
 0x17f   :  { %4701 = vmatprep.mubr.f32.mxu0 %v6178_v55 }
 0x182   :  { %4702 = vmatmul.mubr.f32.gmra.mrb[4].mxu0 %v6188_v59 }
 0x183   :  { %4704 = vmatprep.mubr.f32.mxu0 %v6265_v16 }
 0x186   :  { %4705 = vmatmul.mubr.f32.gmra.mrb[6].mxu0 %v6267_v5 }
 0x187   :  { %4707 = vmatprep.mubr.f32.mxu0 %v6275_v38 }
 0x18a   :  { %4708 = vmatmul.mubr.f32.gmra.mrb[8].mxu0 %v6277_v2 }
 0x18b   :  { %4710 = vmatprep.mubr.f32.mxu0 %v6321_v34 }
 0x18e   :  { %4711 = vmatmul.mubr.f32.gmra.mrb[10].mxu0 %v6348_v53 }
 0x18f   :  { %4713 = vmatprep.mubr.f32.mxu0 %v6363_v24 }
 0x192   :  { %4714 = vmatmul.mubr.f32.gmra.mrb[12].mxu0 %v6369_v4 }
 0x193   :  { %4716 = vmatprep.mubr.f32.mxu0 %v6397_v8 }
 0x196   :  { %4717 = vmatmul.mubr.f32.gmra.mrb[14].mxu0 %v7913_v21 }
 0x197   :  { %4719 = vmatprep.mubr.f32.mxu0 %v7914_v60 }
 0x19a   :  { %4720 = vmatmul.mubr.f32.gmra.mrb[16].mxu0 %v7916_v58 }
 0x19b   :  { %4722 = vmatprep.mubr.f32.mxu0 %v7917_v36 }
 0x19e   :  { %4723 = vmatmul.mubr.f32.gmra.mrb[18].mxu0 %v6495_v13 }
 0x19f   :  { %4725 = vmatprep.mubr.f32.mxu0 %v7918_v61 }
 0x1a2   :  { %4726 = vmatmul.mubr.f32.gmra.mrb[20].mxu0 %v7919_v14 }
 0x1a3   :  { %4728 = vmatprep.mubr.f32.mxu0 %v6567_v62 }
 0x1a6   :  { %4729 = vmatmul.mubr.f32.gmra.mrb[22].mxu0 %v7920_v49 }
 0x1a7   :  { %4731 = vmatprep.mubr.f32.mxu0 %v7921_v43 }
 0x1aa   :  { %4732 = vmatmul.mubr.f32.gmra.mrb[24].mxu0 %v7922_v18 }
 0x1ab   :  { %4734 = vmatprep.mubr.f32.mxu0 %v7923_v25 }
 0x1ae   :  { %4735 = vmatmul.mubr.f32.gmra.mrb[26].mxu0 %v7924_v47 }
 0x1af   :  { %4737 = vmatprep.mubr.f32.mxu0 %v8011_v17 }
 0x1b2   :  { %4738 = vmatmul.mubr.f32.gmra.mrb[28].mxu0 %v8012_v32 }
 0x1b3   :  { %4740 = vmatprep.mubr.f32.mxu0 %v8013_v42 }
 0x1b6   :  { %4741 = vmatmul.mubr.f32.gmra.mrb[30].mxu0 %v8014_v22 }
 0x24d   :  { %v4697_v48 = vpop.f32.mrb[0].mxu0 }
 0x24e   :  { %5835 = vtanh.f32 %v4697_v48  ;;  %v1865_v11 = vpop.f32.mrb[1].mxu0 }
 0x24f   :  { %5837 = vtanh.f32 %v1865_v11 }
 0x251   :  { %v4700_v19 = vpop.f32.mrb[2].mxu0 }
 0x252   :  { %v1877_v27 = vpop.f32.mrb[3].mxu0  ;;  %5839 = vtanh.f32 %v4700_v19 }
 0x253   :  { %5841 = vtanh.f32 %v1877_v27 }
 0x255   :  { %v4703_v52 = vpop.f32.mrb[4].mxu0 }
 0x256   :  { %v1889_v9 = vpop.f32.mrb[5].mxu0  ;;  %5843 = vtanh.f32 %v4703_v52 }
 0x257   :  { %5845 = vtanh.f32 %v1889_v9 }
 0x258   :  { %v5836_v46 = vpop.eup %5835 }
 0x259   :  { %2124 = vperm.xlu0 %5833, %v5836_v46   ;;  %v4706_v15 = vpop.f32.mrb[6].mxu0  ;;  %v5838_v35 = vpop.eup %5837 }
 0x25a   :  { %v1901_v63 = vpop.f32.mrb[7].mxu0  ;;  %5847 = vtanh.f32 %v4706_v15 }
 0x25b   :  { %5849 = vtanh.f32 %v1901_v63 }
 0x25c   :  { %v5840_v20 = vpop.eup %5839 }
 0x25d   :  { %2121 = vperm.xlu0 %5833, %v5838_v35   ;;  %v4709_v10 = vpop.f32.mrb[8].mxu0  ;;  %v5842_v11 = vpop.eup %5841 }
 0x25e   :  { %v1913_v37 = vpop.f32.mrb[9].mxu0  ;;  %5851 = vtanh.f32 %v4709_v10 }
 0x260   :  { %v5844_v56 = vpop.eup %5843 }
 0x261   :  { %2130 = vperm.xlu0 %5833, %v5840_v20   ;;  %v4712_v48 = vpop.f32.mrb[10].mxu0  ;;  %v5846_v57 = vpop.eup %5845 }
 0x262   :  { %v1925_v41 = vpop.f32.mrb[11].mxu0 }
 0x264   :  { %v5848_v20 = vpop.eup %5847 }
 0x265   :  { %2127 = vperm.xlu0 %5833, %v5842_v11   ;;  %v4715_v40 = vpop.f32.mrb[12].mxu0  ;;  %v5850_v22 = vpop.eup %5849 }
 0x266   :  { %v1937_v19 = vpop.f32.mrb[13].mxu0 }
 0x268   :  { %v5852_v63 = vpop.eup %5851 }
 0x269   :  { %2136 = vperm.xlu0 %5833, %v5844_v56   ;;  %v4718_v46 = vpop.f32.mrb[14].mxu0 }
 0x26a   :  { %v1949_v27 = vpop.f32.mrb[15].mxu0 }
 0x26d   :  { %2133 = vperm.xlu0 %5833, %v5846_v57   ;;  %v4721_v52 = vpop.f32.mrb[16].mxu0 }
 0x26e   :  { %5853 = vtanh.f32 %v4721_v52  ;;  %v1961_v35 = vpop.f32.mrb[17].mxu0 }
 0x26f   :  { %5855 = vtanh.f32 %v1913_v37 }
 0x270   :  { %5857 = vtanh.f32 %v1961_v35 }
 0x271   :  { %2142 = vperm.xlu0 %5833, %v5848_v20   ;;  %v4724_v9 = vpop.f32.mrb[18].mxu0  ;;  %5859 = vtanh.f32 %v4712_v48 }
 0x272   :  { %v1973_v11 = vpop.f32.mrb[19].mxu0  ;;  %5861 = vtanh.f32 %v4724_v9 }
 0x273   :  { %5863 = vtanh.f32 %v1925_v41 }
 0x274   :  { %5865 = vtanh.f32 %v1973_v11 }
 0x275   :  { %2139 = vperm.xlu0 %5833, %v5850_v22   ;;  %v4727_v15 = vpop.f32.mrb[20].mxu0  ;;  %5867 = vtanh.f32 %v4715_v40 }
 0x276   :  { %v1985_v56 = vpop.f32.mrb[21].mxu0  ;;  %5869 = vtanh.f32 %v4727_v15 }
 0x277   :  { %5871 = vtanh.f32 %v1937_v19 }
 0x278   :  { %v5854_v42 = vpop.eup %5853  ;;  %5873 = vtanh.f32 %v1985_v56 }
 0x279   :  { %2148 = vperm.xlu0 %5833, %v5852_v63   ;;  %2172 = vperm.xlu1 %5834, %v5854_v42   ;;  %v4730_v57 = vpop.f32.mrb[22].mxu0  ;;  %v5856_v52 = vpop.eup %5855  ;;  %5875 = vtanh.f32 %v1949_v27 }
 0x27a   :  { %v1997_v10 = vpop.f32.mrb[23].mxu0  ;;  %v5858_v37 = vpop.eup %5857  ;;  %5877 = vtanh.f32 %v4730_v57 }
 0x27b   :  { %v5860_v22 = vpop.eup %5859  ;;  %5879 = vtanh.f32 %v4718_v46 }
 0x27c   :  { %v5862_v20 = vpop.eup %5861  ;;  %5881 = vtanh.f32 %v1997_v10 }
 0x27d   :  { %2145 = vperm.xlu0 %5833, %v5856_v52   ;;  %2169 = vperm.xlu1 %5834, %v5858_v37   ;;  %v4733_v35 = vpop.f32.mrb[24].mxu0  ;;  %v5864_v42 = vpop.eup %5863 }
 0x27e   :  { %v2009_v48 = vpop.f32.mrb[25].mxu0  ;;  %v5866_v63 = vpop.eup %5865  ;;  %5883 = vtanh.f32 %v4733_v35 }
 0x27f   :  { %v5868_v52 = vpop.eup %5867  ;;  %5885 = vtanh.f32 %v2009_v48 }
 0x280   :  { %v5870_v37 = vpop.eup %5869 }
 0x281   :  { %2154 = vperm.xlu0 %5833, %v5860_v22   ;;  %2178 = vperm.xlu1 %5834, %v5862_v20   ;;  %v4736_v9 = vpop.f32.mrb[26].mxu0  ;;  %v5872_v22 = vpop.eup %5871 }
 0x282   :  { %v2021_v41 = vpop.f32.mrb[27].mxu0  ;;  %v5874_v20 = vpop.eup %5873  ;;  %5887 = vtanh.f32 %v4736_v9 }
 0x283   :  { %v5876_v56 = vpop.eup %5875  ;;  %5889 = vtanh.f32 %v2021_v41  ;;  %v7016_v41 = vpack.c.bf16 %v6155_v45, %v6140_v39 }
 0x284   :  { %v5878_v27 = vpop.eup %5877 }
 0x285   :  { %2151 = vperm.xlu0 %5833, %v5864_v42   ;;  %2175 = vperm.xlu1 %5834, %v5866_v63   ;;  %v4739_v11 = vpop.f32.mrb[28].mxu0  ;;  %v5880_v57 = vpop.eup %5879 }
 0x286   :  { %v2033_v40 = vpop.f32.mrb[29].mxu0  ;;  %v5882_v42 = vpop.eup %5881  ;;  %5891 = vtanh.f32 %v4739_v11  ;;  %v7758_v11 = vmov 0.0|0.0  }
 0x287   :  { %5893 = vtanh.f32 %v2033_v40  ;;  %5355 = vmatprep.subr.bf16.mxu1 %v7758_v11 }
 0x288   :  { %v5884_v46 = vpop.eup %5883  ;;  %5357 = vmatpush3.bf16.msra.mxu1 %v7016_v41 }
 0x289   :  { %2160 = vperm.xlu0 %5833, %v5868_v52   ;;  %2184 = vperm.xlu1 %5834, %v5870_v37   ;;  %v4742_v15 = vpop.f32.mrb[30].mxu0  ;;  %v5886_v10 = vpop.eup %5885 }
 0x28a   :  { %v2045_v19 = vpop.f32.mrb[31].mxu0  ;;  %5358 = vmatprep.subr.bf16.mxu1 %v7758_v11 }
 0x28b   :  { %5895 = vtanh.f32 %v2045_v19 }
 0x28c   :  { %v5888_v63 = vpop.eup %5887  ;;  %5897 = vtanh.f32 %v4742_v15 }
 0x28d   :  { %2157 = vperm.xlu0 %5833, %v5872_v22   ;;  %2181 = vperm.xlu1 %5834, %v5874_v20   ;;  %v5890_v35 = vpop.eup %5889 }
 0x290   :  { %v5892_v52 = vpop.eup %5891 }
 0x291   :  { %2163 = vperm.xlu0 %5833, %v5876_v56   ;;  %2190 = vperm.xlu1 %5834, %v5878_v27   ;;  %v5894_v48 = vpop.eup %5893 }
 0x295   :  { %2166 = vperm.xlu0 %5833, %v5880_v57   ;;  %2187 = vperm.xlu1 %5834, %v5882_v42   ;;  %v5896_v37 = vpop.eup %5895 }
 0x296   :  { %v5898_v9 = vpop.eup %5897 }
 0x299   :  { %2196 = vperm.xlu1 %5834, %v5884_v46  }
 0x29d   :  { %2193 = vperm.xlu1 %5834, %v5886_v10  }
 0x2a1   :  { %2202 = vperm.xlu1 %5834, %v5888_v63  }
 0x2a5   :  { %2199 = vperm.xlu1 %5834, %v5890_v35   ;;  %v2216_v35 = vlaneseq }
 0x2a7   :  { %v7042_v17 = vshrl.u32 %v2216_v35, 7 }
 0x2a9   :  { %2208 = vperm.xlu1 %5834, %v5892_v52  }
 0x2ad   :  { %2205 = vperm.xlu1 %5834, %v5894_v48  }
 0x2b1   :  { %2211 = vperm.xlu1 %5834, %v5896_v37   ;;  %v7035_v37 = vand.u32 127, %v2216_v35 }
 0x2b3   :  { %v2229_v11 = vadd.s32 4294967280, %v7035_v37  ;;  %v2222_v47 = vadd.s32 4294967288, %v7035_v37  ;;  %v2220_v18 = vsub.s32 %v7035_v37, %v7042_v17  ;;  %v2236_v43 = vadd.s32 4294967272, %v7035_v37 }
 0x2b4   :  { %v2243_v62 = vadd.s32 4294967264, %v7035_v37  ;;  %v2257_v36 = vadd.s32 4294967248, %v7035_v37  ;;  %v2250_v29 = vadd.s32 4294967256, %v7035_v37  ;;  %v2264_v3 = vadd.s32 4294967240, %v7035_v37 }
 0x2b5   :  { %2214 = vperm.xlu1 %5834, %v5898_v9   ;;  %v2232_v49 = vsub.s32 %v2229_v11, %v7042_v17  ;;  %v2225_v14 = vsub.s32 %v2222_v47, %v7042_v17  ;;  %v2239_v60 = vsub.s32 %v2236_v43, %v7042_v17 }
 0x2b6   :  { %v2246_v0 = vsub.s32 %v2243_v62, %v7042_v17  ;;  %v2260_v12 = vsub.s32 %v2257_v36, %v7042_v17 }
 0x2d8   :  { %v2125_v40 = vpop.permute.xlu0 %2124 }
 0x2d9   :  { %v2226_v11 = vrot.slane %v2125_v40, %v2225_v14 }
 0x2dc   :  { %v2122_v19 = vpop.permute.xlu0 %2121 }
 0x2dd   :  { %v2221_v35 = vrot.slane %v2122_v19, %v2220_v18 }
 0x2df   :  { %v2228_v19 = vsel %vm2227_vm0, %v2226_v11, %v2221_v35  ;;  %v2267_v35 = vsub.s32 %v2264_v3, %v7042_v17  ;;  %v2278_v3 = vadd.s32 4294967224, %v7035_v37 }
 0x2e0   :  { %v2131_v15 = vpop.permute.xlu0 %2130 }
 0x2e4   :  { %v2128_v22 = vpop.permute.xlu0 %2127 }
 0x2e5   :  { %v2233_v33 = vrot.slane %v2128_v22, %v2232_v49 }
 0x2e7   :  { %v2235_v22 = vsel %vm2234_vm1, %v2233_v33, %v2228_v19  ;;  %v2285_v33 = vadd.s32 4294967216, %v7035_v37 }
 0x2e8   :  { %v7021_v20 = vpop.permute.xlu0 %2136 }
 0x2ec   :  { %v7023_v56 = vpop.permute.xlu0 %2133 }
 0x2ed   :  { %v2247_v62 = vrot.slane %v7023_v56, %v2246_v0 }
 0x2f0   :  { %v7025_v57 = vpop.permute.xlu0 %2142 }
 0x2f4   :  { %v7027_v45 = vpop.permute.xlu0 %2139 }
 0x2f8   :  { %v2173_v27 = vpop.permute.xlu1 %2172  ;;  %v7029_v10 = vpop.permute.xlu0 %2148 }
 0x2f9   :  { %v2334_v47 = vrot.slane %v2173_v27, %v2225_v14  ;;  %v2240_v14 = vrot.slane %v2131_v15, %v2239_v60  ;;  %v2253_v27 = vsub.s32 %v2250_v29, %v7042_v17 }
 0x2fb   :  { %v2242_v11 = vsel %vm2241_vm2, %v2240_v14, %v2235_v22 }
 0x2fc   :  { %v2170_v39 = vpop.permute.xlu1 %2169  ;;  %v7033_v52 = vpop.permute.xlu0 %2145  ;;  %v2249_v56 = vsel %vm2248_vm3, %v2247_v62, %v2242_v11 }
 0x2fd   :  { %v2330_v58 = vrot.slane %v2170_v39, %v2220_v18  ;;  %v2271_v18 = vadd.s32 4294967232, %v7035_v37 }
 0x2ff   :  { %v2335_v43 = vsel %vm2227_vm0, %v2334_v47, %v2330_v58  ;;  %v2274_v58 = vsub.s32 %v2271_v18, %v7042_v17 }
 0x300   :  { %v2179_v42 = vpop.permute.xlu1 %2178  ;;  %v7040_v32 = vpop.permute.xlu0 %2154 }
 0x304   :  { %v2176_v46 = vpop.permute.xlu1 %2175  ;;  %v7053_v61 = vpop.permute.xlu0 %2151 }
 0x305   :  { %v2339_v50 = vrot.slane %v2176_v46, %v2232_v49  ;;  %v2344_v46 = vrot.slane %v2179_v42, %v2239_v60  ;;  %v2254_v60 = vrot.slane %v7021_v20, %v2253_v27  ;;  %v2275_v20 = vrot.slane %v7033_v52, %v2274_v58 }
 0x306   :  { %v2313_v52 = vadd.s32 4294967184, %v7035_v37 }
 0x307   :  { %v2340_v49 = vsel %vm2234_vm1, %v2339_v50, %v2335_v43  ;;  %v2256_v18 = vsel %vm2255_vm4, %v2254_v60, %v2249_v56  ;;  %v2288_v43 = vsub.s32 %v2285_v33, %v7042_v17  ;;  %vm2410_vm1 = vcmask 1041408  }
 0x308   :  { %v7031_v63 = vpop.permute.xlu1 %2184  ;;  %v7067_v40 = vpop.permute.xlu0 %2160  ;;  %v2345_v50 = vsel %vm2241_vm2, %v2344_v46, %v2340_v49  ;;  %v2281_v49 = vsub.s32 %v2278_v3, %v7042_v17  ;;  %vm5980_vm2 = vmmov 0  }
 0x309   :  { %v2354_v42 = vrot.slane %v7031_v63, %v2253_v27  ;;  %v2268_v63 = vrot.slane %v7025_v57, %v2267_v35  ;;  %v2306_v27 = vadd.s32 4294967192, %v7035_v37 }
 0x30c   :  { %v2182_v48 = vpop.permute.xlu1 %2181  ;;  %v2158_v47 = vpop.permute.xlu0 %2157 }
 0x30d   :  { %v2349_v39 = vrot.slane %v2182_v48, %v2246_v0  ;;  %v2261_v0 = vrot.slane %v7027_v45, %v2260_v12  ;;  %v2292_v48 = vadd.s32 4294967208, %v7035_v37  ;;  %v2299_v45 = vadd.s32 4294967200, %v7035_v37 }
 0x30f   :  { %v2350_v15 = vsel %vm2248_vm3, %v2349_v39, %v2345_v50  ;;  %v2295_v14 = vsub.s32 %v2292_v48, %v7042_v17  ;;  %v2302_v33 = vsub.s32 %v2299_v45, %v7042_v17 }
 0x310   :  { %v7037_v9 = vpop.permute.xlu1 %2190  ;;  %v2164_v50 = vpop.permute.xlu0 %2163 }
 0x311   :  { %v2364_v39 = vrot.slane %v7037_v9, %v2267_v35  ;;  %v2282_v35 = vrot.slane %v7029_v10, %v2281_v49  ;;  %v2296_v10 = vrot.slane %v7040_v32, %v2295_v14  ;;  %v64_v32 = vld [vmem:[%s7523_s1] sm:$0x3]  ;;  %s5983_s1 = smov [#allocation6]  }
 0x312   :  { %vm2087_vm0 = vcmp.eq.f32.partialorder %v64_v32, 0.0  ;;  %v8032_v32 = vld [vmem:[#allocation56_spill] sm:$0xff]  ;;  %s3758_s9 = sshll.u32 %s5983_s1, 4  ;;  %s3759_s9 = int_to_ptr.vmem [resolvable:$true] %s3758_s9 }
 0x313   :  { %s5925_s10 = scalar_lea.vmem %s3759_s9, 32  ;;  %p5930_p9 = scmp.lt.s32.totalorder %s3759_s9, %s3759_s9 }
 0x314   :  { %v7045_v25 = vpop.permute.xlu1 %2187  ;;  %v2167_v45 = vpop.permute.xlu0 %2166  ;;  %p5926_p8 = scmp.ne.s32.totalorder %s3759_s9, %s5925_s10  ;;  %p5931_p10 = scmp.lt.s32.totalorder %s5925_s10, %s5925_s10 }
 0x315   :  { %v2359_v29 = vrot.slane %v7045_v25, %v2260_v12  ;;  %v2355_v25 = vsel %vm2255_vm4, %v2354_v42, %v2350_v15  ;;  %v2263_v12 = vsel %vm2262_vm5, %v2261_v0, %v2256_v18  ;;  %v2320_v0 = vadd.s32 4294967176, %v7035_v37 }
 0x316   :  { %v2270_v11 = vsel %vm2269_vm6, %v2268_v63, %v2263_v12  ;;  %v2316_v42 = vsub.s32 %v2313_v52, %v7042_v17  ;;  %v2303_v18 = vrot.slane %v2158_v47, %v2302_v33  ;;  %p5932_p11 = por %p5931_p10, %p5930_p9 }
 0x317   :  { %v2360_v22 = vsel %vm2262_vm5, %v2359_v29, %v2355_v25  ;;  %v2277_v57 = vsel %vm2276_vm7, %v2275_v20, %v2270_v11  ;;  %v2309_v29 = vsub.s32 %v2306_v27, %v7042_v17  ;;  %v2323_v37 = vsub.s32 %v2320_v0, %v7042_v17 }
 0x318   :  { %v7055_v13 = vpop.permute.xlu1 %2196  ;;  %v2284_v3 = vsel %vm2283_vm8, %v2282_v35, %v2277_v57  ;;  %v7122_v35 = vpack.c.bf16 %v6188_v59, %v6178_v55  ;;  %v7127_v0 = vpack.c.bf16 %v6267_v5, %v6265_v16  ;;  %v7145_v16 = vpack.c.bf16 %v6369_v4, %v6363_v24  ;;  %p5933_p12 = pnand %p5932_p11, %p5926_p8 }
 0x319   :  { %v2374_v15 = vrot.slane %v7055_v13, %v2281_v49  ;;  %v2310_v47 = vrot.slane %v7067_v40, %v2309_v29  ;;  %v5981_v55 = vmov 0.0   ;;  %v7153_v59 = vpack.c.bf16 %v7913_v21, %v6397_v8 }
 0x31a   :  { %4775 = vmatprep.mubr.msk.f32.mxu1 %vm5980_vm2, %v5981_v55 }
 0x31c   :  { %v2194_v30 = vpop.permute.xlu1 %2193 }
 0x31d   :  { %v2369_v62 = vrot.slane %v2194_v30, %v2274_v58  ;;  %v2365_v30 = vsel %vm2269_vm6, %v2364_v39, %v2360_v22  ;;  %v2289_v58 = vrot.slane %v7053_v61, %v2288_v43  ;;  %v2324_v39 = vrot.slane %v2167_v45, %v2323_v37 }
 0x31f   :  { %v2370_v56 = vsel %vm2276_vm7, %v2369_v62, %v2365_v30  ;;  %v2291_v48 = vsel %vm2290_vm9, %v2289_v58, %v2284_v3  ;;  %v2317_v62 = vrot.slane %v2164_v50, %v2316_v42 }
 0x320   :  { %v7071_v36 = vpop.permute.xlu1 %2202  ;;  %v2375_v61 = vsel %vm2283_vm8, %v2374_v15, %v2370_v56  ;;  %v2298_v12 = vsel %vm2297_vm10, %v2296_v10, %v2291_v48  ;;  %v7116_v56 = vpack.c.bf16 %v6176_v54, %v6170_v51  ;;  %v7133_v51 = vpack.c.bf16 %v6277_v2, %v6275_v38 }
 0x321   :  { %v2384_v13 = vrot.slane %v7071_v36, %v2295_v14  ;;  %v2305_v22 = vsel %vm2304_vm11, %v2303_v18, %v2298_v12  ;;  %v7140_v54 = vpack.c.bf16 %v6348_v53, %v6321_v34  ;;  %v5982_v38 = vmov 1966171168   ;;  %v8023_v12 = vld [vmem:[#allocation36_spill] sm:$0xff] }
 0x322   :  { %v2312_v36 = vsel %vm2311_vm12, %v2310_v47, %v2305_v22  ;;  %5360 = vmatpush3.bf16.msra.mxu1 %v7116_v56  ;;  %v2423_v34 = vunpack.c.l.s4 %v5982_v38  ;;  %v8025_v22 = vld [vmem:[#allocation48_spill] sm:$0xff]  ;;  %v8029_v47 = vld [vmem:[#allocation49_spill] sm:$0xff]  ;;  %v8045_v38 = vld [vmem:[#allocation27_spill] sm:$0xff] }
 0x323   :  { %v2319_v52 = vsel %vm2318_vm13, %v2317_v62, %v2312_v36  ;;  %v8026_v62 = vld [vmem:[#allocation47_spill] sm:$0xff]  ;;  %v8034_v36 = vld [vmem:[#allocation69_spill] sm:$0xff] }
 0x324   :  { %v2200_v19 = vpop.permute.xlu1 %2199  ;;  %v2326_v57 = vsel %vm2325_vm14, %v2324_v39, %v2319_v52  ;;  %v2424_v24 = vunpack.c.0.s8 %v2423_v34  ;;  %v8037_v52 = vld [vmem:[#allocation75_spill] sm:$0xff] }
 0x325   :  { %v2379_v9 = vrot.slane %v2200_v19, %v2288_v43 }
 0x326   :  { %v2427_v4 = vsub.s32 %v2424_v24, %v7042_v17  ;;  %v8046_v24 = vld [vmem:[#allocation38_spill] sm:$0xff] }
 0x327   :  { %v2380_v19 = vsel %vm2290_vm9, %v2379_v9, %v2375_v61  ;;  %v8015_v9 = vmov 0.0|0.0  }
 0x328   :  { %v2209_v46 = vpop.permute.xlu1 %2208  ;;  %v2385_v20 = vsel %vm2297_vm10, %v2384_v13, %v2380_v19  ;;  %5361 = vmatprep.subr.bf16.mxu1 %v8015_v9  ;;  %v8016_v19 = vld [vmem:[#allocation32_spill] sm:$0xff]  ;;  %v8020_v13 = vld [vmem:[#allocation33_spill] sm:$0xff] }
 0x329   :  { %v2394_v27 = vrot.slane %v2209_v46, %v2309_v29  ;;  %5363 = vmatpush3.bf16.msra.mxu1 %v7122_v35 }
 0x32a   :  { %5364 = vmatprep.subr.bf16.mxu1 %v8015_v9 }
 0x32c   :  { %v2206_v60 = vpop.permute.xlu1 %2205 }
 0x32d   :  { %v2389_v43 = vrot.slane %v2206_v60, %v2302_v33  ;;  %5366 = vmatpush3.bf16.msra.mxu1 %v7127_v0 }
 0x32e   :  { %5367 = vmatprep.subr.bf16.mxu1 %v8015_v9 }
 0x32f   :  { %v2390_v63 = vsel %vm2304_vm11, %v2389_v43, %v2385_v20  ;;  %v8017_v43 = vld [vmem:[#allocation30_spill] sm:$0xff] }
 0x330   :  { %v2212_v25 = vpop.permute.xlu1 %2211  ;;  %v2395_v14 = vsel %vm2311_vm12, %v2394_v27, %v2390_v63  ;;  %v8018_v10 = vpack.c.bf16 %v8016_v19, %v8017_v43  ;;  %v8027_v63 = vpack.c.bf16 %v8025_v22, %v8026_v62  ;;  %v8031_v27 = vld [vmem:[#allocation63_spill] sm:$0xff]  ;;  %v8052_v43 = vld [vmem:[#allocation54_spill] sm:$0xff]  ;;  %v5458_v22 = vpack.c.bf16 %v7977_v6, %v7973_v28  ;;  %v8061_v6 = vld [vmem:[#allocation60_spill] sm:$0xff] }
 0x331   :  { %v2399_v49 = vrot.slane %v2212_v25, %v2316_v42  ;;  %5369 = vmatpush3.bf16.msra.mxu1 %v7133_v51  ;;  %v8022_v25 = vld [vmem:[#allocation37_spill] sm:$0xff]  ;;  %v8060_v28 = vld [vmem:[#allocation58_spill] sm:$0xff] }
 0x332   :  { %5370 = vmatprep.subr.bf16.mxu1 %v8015_v9  ;;  %v8024_v20 = vpack.c.bf16 %v8022_v25, %v8023_v12  ;;  %v5452_v12 = vpack.c.bf16 %v7968_v7, %v7964_v1  ;;  %v5461_v1 = vpack.c.bf16 %v7982_v23, %v7978_v26  ;;  %v8056_v7 = vld [vmem:[#allocation44_spill] sm:$0xff]  ;;  %v8062_v23 = vld [vmem:[#allocation65_spill] sm:$0xff] }
 0x333   :  { %v2400_v30 = vsel %vm2318_vm13, %v2399_v49, %v2395_v14  ;;  %v8028_v49 = vld [vmem:[#allocation50_spill] sm:$0xff]  ;;  %v8035_v14 = vld [vmem:[#allocation67_spill] sm:$0xff]  ;;  %v8063_v26 = vld [vmem:[#allocation68_spill] sm:$0xff] }
 0x334   :  { %v2215_v11 = vpop.permute.xlu1 %2214  ;;  %v8030_v39 = vpack.c.bf16 %v8028_v49, %v8029_v47  ;;  %v5473_v49 = vpack.c.bf16 %v8063_v26, %v8062_v23  ;;  %v8106_v23 = vld [vmem:[#allocation77_spill] sm:$0xff]  ;;  %v8107_v26 = vld [vmem:[#allocation83_spill] sm:$0xff] }
 0x335   :  { %v2404_v33 = vrot.slane %v2215_v11, %v2323_v37  ;;  %5372 = vmatpush3.bf16.msra.mxu1 %v7140_v54  ;;  %v8019_v37 = vld [vmem:[#allocation35_spill] sm:$0xff]  ;;  %v8033_v11 = vpack.c.bf16 %v8031_v27, %v8032_v32 }
 0x336   :  { %5373 = vmatprep.subr.bf16.mxu1 %v8015_v9  ;;  %v8021_v45 = vpack.c.bf16 %v8019_v37, %v8020_v13  ;;  %v8054_v13 = vld [vmem:[#allocation61_spill] sm:$0xff]  ;;  %v8071_v32 = vld [vmem:[#allocation95_spill] sm:$0xff] }
 0x337   :  { %v2405_v58 = vsel %vm2325_vm14, %v2404_v33, %v2400_v30  ;;  %v8036_v33 = vpack.c.bf16 %v8034_v36, %v8035_v14  ;;  %v8038_v30 = vld [vmem:[#allocation73_spill] sm:$0xff]  ;;  %v8073_v14 = vld [vmem:[#allocation100_spill] sm:$0xff] }
 0x338   :  { %v2407_v40 = vsel %vm2406_vm15, %v2405_v58, %v2326_v57  ;;  %v8039_v57 = vpack.c.bf16 %v8037_v52, %v8038_v30  ;;  %v8040_v58 = vld [vmem:[#allocation19_spill] sm:$0xff]  ;;  %v8072_v36 = vld [vmem:[#allocation97_spill] sm:$0xff] }
 0x339   :  { %v2409_v50 = vsel %vm2087_vm0, -inf, %v2407_v40  ;;  %5375 = vmatpush3.bf16.msra.mxu1 %v7145_v16  ;;  %v8041_v40 = vld [vmem:[#allocation20_spill] sm:$0xff]  ;;  %v8074_v30 = vld [vmem:[#allocation107_spill] sm:$0xff] }
 0x33a   :  { %v2411_v46 = vsel %vm2410_vm1, %v2409_v50, -inf  ;;  %5376 = vmatprep.subr.bf16.mxu1 %v8015_v9 }
 0x33b   :  { %2412 = vmax.xlane.f32.xlu0 %v2411_v46  ;;  %v8042_v46 = vld [vmem:[#allocation22_spill] sm:$0xff] }
 0x33d   :  { %5378 = vmatpush3.bf16.msra.mxu1 %v7153_v59 }
 0x33e   :  { %5379 = vmatprep.subr.bf16.mxu1 %v8015_v9 }
 0x3c8   :  { %v2413_v2 = vpop.xlane.xlu0 %2412 }
 0x3c9   :  { %v2414_v53 = vsub.f32 %v2409_v50, %v2413_v2  ;;  %v5404_v50 = vpack.c.bf16 %v8041_v40, %v8040_v58  ;;  %v8043_v2 = vld [vmem:[#allocation24_spill] sm:$0xff] }
 0x3cb   :  { %v2415_v5 = vmul.f32 1.442695, %v2414_v53  ;;  %v5407_v53 = vpack.c.bf16 %v8043_v2, %v8042_v46  ;;  %v8077_v46 = vld [vmem:[#allocation119_spill] sm:$0xff] }
 0x3cd   :  { %5899 = vpow2.f32 %v2415_v5  ;;  %v8044_v5 = vld [vmem:[#allocation25_spill] sm:$0xff] }
 0x3ce   :  { %v5410_v34 = vpack.c.bf16 %v8045_v38, %v8044_v5  ;;  %v8078_v5 = vld [vmem:[#allocation123_spill] sm:$0xff]  ;;  %v8079_v38 = vld [vmem:[#allocation124_spill] sm:$0xff] }
 0x3d7   :  { %v7159_v15 = vpop.eup %5899 }
 0x3d8   :  { %v2417_v8 = vsel %vm2410_vm1, %v7159_v15, 0.0  ;;  %v2428_v21 = vrot.slane %v7159_v15, %v2427_v4 }
 0x3d9   :  { %2418 = vadd.xlane.f32.xlu1 %v2417_v8 }
 0x3da   :  { %v2429_v29 = vcombine.high %v2428_v21, %v2428_v21  ;;  %v2436_v60 = vrot.slane %v2428_v21, %v2427_v4  ;;  %v8048_v21 = vld [vmem:[#allocation40_spill] sm:$0xff] }
 0x3dc   :  { %v7164_v3 = vand.u32 4294901760, %v2436_v60  ;;  %v7166_v42 = vrot.slane %v2429_v29, %v2427_v4  ;;  %v8047_v4 = vld [vmem:[#allocation39_spill] sm:$0xff]  ;;  %v8049_v29 = vld [vmem:[#allocation41_spill] sm:$0xff] }
 0x3dd   :  { %v5413_v8 = vpack.c.bf16 %v8047_v4, %v8046_v24  ;;  %v8080_v4 = vld [vmem:[#allocation86_spill] sm:$0xff] }
 0x3de   :  { %v7169_v61 = vsub.f32 %v2436_v60, %v7164_v3  ;;  %v5416_v60 = vpack.c.bf16 %v8049_v29, %v8048_v21  ;;  %v7338_v52 = vand.u32 4294901760, %v7166_v42  ;;  %v8083_v29 = vld [vmem:[#allocation93_spill] sm:$0xff] }
 0x3e0   :  { %v2529_v48 = vand.u32 4294901760, %v7169_v61  ;;  %v7348_v40 = vsub.f32 %v7166_v42, %v7338_v52 }
 0x3e2   :  { %v2530_v17 = vsub.f32 %v7169_v61, %v2529_v48 }
 0x3e4   :  { %v2531_v18 = vand.u32 4294901760, %v2530_v17  ;;  %v8050_v17 = vld [vmem:[#allocation46_spill] sm:$0xff] }
 0x3e6   :  { %4776 = vmatmul.mubr.f32.vlgmr.msra.gmra.mrb[0].mxu1 %v2531_v18  ;;  %v8051_v18 = vld [vmem:[#allocation52_spill] sm:$0xff] }
 0x3e7   :  { %5381 = vmatpush3.bf16.msra.mxu1 %v8018_v10  ;;  %4810 = vmatprep.mubr.msk.f32.mxu1 %vm5980_vm2, %v5981_v55  ;;  %v5419_v19 = vpack.c.bf16 %v8051_v18, %v8050_v17  ;;  %v8053_v10 = vld [vmem:[#allocation57_spill] sm:$0xff]  ;;  %v8086_v18 = vld [vmem:[#allocation98_spill] sm:$0xff] }
 0x3e8   :  { %5382 = vmatprep.subr.bf16.mxu1 %v8015_v9  ;;  %v5422_v37 = vpack.c.bf16 %v8053_v10, %v8052_v43  ;;  %v8089_v10 = vld [vmem:[#allocation110_spill] sm:$0xff] }
 0x3eb   :  { %5384 = vmatpush3.bf16.msra.mxu1 %v8021_v45  ;;  %v8055_v45 = vld [vmem:[#allocation64_spill] sm:$0xff] }
 0x3ec   :  { %5385 = vmatprep.subr.bf16.mxu1 %v8015_v9  ;;  %v5425_v25 = vpack.c.bf16 %v8055_v45, %v8054_v13  ;;  %v8092_v45 = vld [vmem:[#allocation115_spill] sm:$0xff] }
 0x3ef   :  { %5387 = vmatpush3.bf16.msra.mxu1 %v8024_v20  ;;  %v5455_v20 = vpack.c.bf16 %v7972_v44, %v7969_v31  ;;  %v8057_v31 = vld [vmem:[#allocation45_spill] sm:$0xff] }
 0x3f0   :  { %5388 = vmatprep.subr.bf16.mxu1 %v8015_v9  ;;  %v5464_v44 = vpack.c.bf16 %v8057_v31, %v8056_v7  ;;  %v8098_v7 = vld [vmem:[#allocation132_spill] sm:$0xff]  ;;  %v8099_v31 = vld [vmem:[#allocation129_spill] sm:$0xff] }
 0x3f3   :  { %5390 = vmatpush3.bf16.msra.mxu1 %v8027_v63  ;;  %v5470_v63 = vpack.c.bf16 %v8061_v6, %v8060_v28  ;;  %v8104_v28 = vld [vmem:[#allocation66_spill] sm:$0xff] }
 0x3f4   :  { %5391 = vmatprep.subr.bf16.mxu1 %v8015_v9  ;;  %v8105_v6 = vld [vmem:[#allocation74_spill] sm:$0xff] }
 0x3f7   :  { %5393 = vmatpush3.bf16.msra.mxu1 %v8030_v39 }
 0x3f8   :  { %5394 = vmatprep.subr.bf16.mxu1 %v8015_v9 }
 0x3fb   :  { %5396 = vmatpush3.bf16.msra.mxu1 %v8033_v11 }
 0x3fc   :  { %5397 = vmatprep.subr.bf16.mxu1 %v8015_v9 }
 0x3ff   :  { %5399 = vmatpush3.bf16.msra.mxu1 %v8036_v33  ;;  %v7334_v33 = vpack.c.bf16 %v8073_v14, %v8072_v36  ;;  %v8115_v36 = vld [vmem:[#allocation113_spill] sm:$0xff] }
 0x400   :  { %5400 = vmatprep.subr.bf16.mxu1 %v8015_v9 }
 0x403   :  { %5402 = vmatpush3.bf16.msra.mxu1 %v8039_v57  ;;  %v8075_v57 = vld [vmem:[#allocation109_spill] sm:$0xff] }
 0x404   :  { %5403 = vmatprep.subr.bf16.mxu1 %v8015_v9  ;;  %v7343_v58 = vpack.c.bf16 %v8075_v57, %v8074_v30  ;;  %v8116_v30 = vld [vmem:[#allocation118_spill] sm:$0xff]  ;;  %v8117_v57 = vld [vmem:[#allocation121_spill] sm:$0xff] }
 0x406   :  { %4811 = vmatmul.mubr.f32.vlgmr.msra.gmra.mrb[0].mxu1 %v7164_v3 }
 0x407   :  { %5405 = vmatpush3.bf16.msra.mxu1 %v5404_v50  ;;  %4845 = vmatprep.mubr.msk.f32.mxu1 %vm5980_vm2, %v5981_v55  ;;  %v8076_v50 = vld [vmem:[#allocation114_spill] sm:$0xff] }
 0x408   :  { %5406 = vmatprep.subr.bf16.mxu1 %v8015_v9  ;;  %v7353_v2 = vpack.c.bf16 %v8077_v46, %v8076_v50  ;;  %v5566_v50 = vpack.c.bf16 %v8117_v57, %v8116_v30  ;;  %v8118_v46 = vld [vmem:[#allocation127_spill] sm:$0xff] }
 0x40b   :  { %5408 = vmatpush3.bf16.msra.mxu1 %v5407_v53  ;;  %v3170_v53 = vand.u32 4294901760, %v7348_v40 }
 0x40c   :  { %5409 = vmatprep.subr.bf16.mxu1 %v8015_v9 }
 0x40d   :  { %v3171_v42 = vsub.f32 %v7348_v40, %v3170_v53 }
 0x40f   :  { %5411 = vmatpush3.bf16.msra.mxu1 %v5410_v34  ;;  %v7360_v34 = vpack.c.bf16 %v8079_v38, %v8078_v5  ;;  %v3172_v24 = vand.u32 4294901760, %v3171_v42  ;;  %v8119_v5 = vld [vmem:[#allocation128_spill] sm:$0xff]  ;;  %v8120_v42 = vld [vmem:[#allocation70_spill] sm:$0xff] }
 0x410   :  { %5412 = vmatprep.subr.bf16.mxu1 %v8015_v9  ;;  %v5569_v38 = vpack.c.bf16 %v8119_v5, %v8118_v46 }
 0x413   :  { %5414 = vmatpush3.bf16.msra.mxu1 %v5413_v8  ;;  %v8081_v8 = vld [vmem:[#allocation78_spill] sm:$0xff] }
 0x414   :  { %5415 = vmatprep.subr.bf16.mxu1 %v8015_v9  ;;  %v8082_v21 = vpack.c.bf16 %v8080_v4, %v8081_v8  ;;  %v8122_v8 = vld [vmem:[#allocation82_spill] sm:$0xff] }
 0x417   :  { %5417 = vmatpush3.bf16.msra.mxu1 %v5416_v60  ;;  %v8084_v60 = vld [vmem:[#allocation90_spill] sm:$0xff] }
 0x418   :  { %5418 = vmatprep.subr.bf16.mxu1 %v8015_v9  ;;  %v8085_v17 = vpack.c.bf16 %v8083_v29, %v8084_v60  ;;  %v8124_v60 = vld [vmem:[#allocation88_spill] sm:$0xff] }
 0x41b   :  { %5420 = vmatpush3.bf16.msra.mxu1 %v5419_v19  ;;  %v8087_v19 = vld [vmem:[#allocation94_spill] sm:$0xff] }
 0x41c   :  { %5421 = vmatprep.subr.bf16.mxu1 %v8015_v9  ;;  %v8088_v43 = vpack.c.bf16 %v8086_v18, %v8087_v19  ;;  %v8126_v19 = vld [vmem:[#allocation101_spill] sm:$0xff] }
 0x41f   :  { %5423 = vmatpush3.bf16.msra.mxu1 %v5422_v37  ;;  %v8090_v37 = vld [vmem:[#allocation108_spill] sm:$0xff] }
 0x420   :  { %5424 = vmatprep.subr.bf16.mxu1 %v8015_v9  ;;  %v8091_v13 = vpack.c.bf16 %v8089_v10, %v8090_v37  ;;  %v8129_v10 = vld [vmem:[#allocation106_spill] sm:$0xff] }
 0x423   :  { %5426 = vmatpush3.bf16.msra.mxu1 %v5425_v25  ;;  %v8093_v25 = vld [vmem:[#allocation112_spill] sm:$0xff] }
 0x424   :  { %5427 = vmatprep.subr.bf16.mxu1 %v8015_v9 }
 0x426   :  { %4846 = vmatmul.mubr.f32.vlgmr.msra.gmra.mrb[0].mxu1 %v7169_v61  ;;  %v8058_v61 = vld [vmem:[#allocation51_spill] sm:$0xff] }
 0x427   :  { %5429 = vmatpush3.bf16.msra.mxu1 %v7016_v41  ;;  %4880 = vmatprep.mubr.msk.f32.mxu1 %vm5980_vm2, %v5981_v55 }
 0x428   :  { %5430 = vmatprep.subr.bf16.mxu1 %v8015_v9 }
 0x42b   :  { %5432 = vmatpush3.bf16.msra.mxu1 %v7116_v56 }
 0x42c   :  { %5433 = vmatprep.subr.bf16.mxu1 %v8015_v9 }
 0x42f   :  { %5435 = vmatpush3.bf16.msra.mxu1 %v7122_v35 }
 0x430   :  { %5436 = vmatprep.subr.bf16.mxu1 %v8015_v9 }
 0x433   :  { %5438 = vmatpush3.bf16.msra.mxu1 %v7127_v0 }
 0x434   :  { %5439 = vmatprep.subr.bf16.mxu1 %v8015_v9 }
 0x437   :  { %5441 = vmatpush3.bf16.msra.mxu1 %v7133_v51 }
 0x438   :  { %5442 = vmatprep.subr.bf16.mxu1 %v8015_v9 }
 0x43b   :  { %5444 = vmatpush3.bf16.msra.mxu1 %v7140_v54 }
 0x43c   :  { %5445 = vmatprep.subr.bf16.mxu1 %v8015_v9 }
 0x43f   :  { %5447 = vmatpush3.bf16.msra.mxu1 %v7145_v16 }
 0x440   :  { %5448 = vmatprep.subr.bf16.mxu1 %v8015_v9 }
 0x443   :  { %5450 = vmatpush3.bf16.msra.mxu1 %v7153_v59 }
 0x444   :  { %5451 = vmatprep.subr.bf16.mxu1 %v8015_v9 }
 0x446   :  { %4881 = vmatmul.mubr.f32.vlgmr.msra.gmra.mrb[0].mxu1 %v2529_v48  ;;  %v8059_v48 = vld [vmem:[#allocation53_spill] sm:$0xff] }
 0x447   :  { %5453 = vmatpush3.bf16.msra.mxu1 %v5452_v12  ;;  %4915 = vmatprep.mubr.msk.f32.mxu1 %vm5980_vm2, %v5981_v55  ;;  %v5467_v62 = vpack.c.bf16 %v8059_v48, %v8058_v61  ;;  %v8094_v12 = vpack.c.bf16 %v8092_v45, %v8093_v25  ;;  %v8101_v61 = vld [vmem:[#allocation134_spill] sm:$0xff]  ;;  %v8102_v48 = vld [vmem:[#allocation133_spill] sm:$0xff] }
 0x448   :  { %5454 = vmatprep.subr.bf16.mxu1 %v8015_v9  ;;  %v8131_v45 = vld [vmem:[#allocation117_spill] sm:$0xff] }
 0x44b   :  { %5456 = vmatpush3.bf16.msra.mxu1 %v5455_v20  ;;  %v8095_v20 = vld [vmem:[#allocation125_spill] sm:$0xff] }
 0x44c   :  { %5457 = vmatprep.subr.bf16.mxu1 %v8015_v9 }
 0x44f   :  { %5459 = vmatpush3.bf16.msra.mxu1 %v5458_v22  ;;  %v8096_v22 = vld [vmem:[#allocation122_spill] sm:$0xff] }
 0x450   :  { %5460 = vmatprep.subr.bf16.mxu1 %v8015_v9 }
 0x453   :  { %5462 = vmatpush3.bf16.msra.mxu1 %v5461_v1  ;;  %v8097_v1 = vpack.c.bf16 %v8095_v20, %v8096_v22  ;;  %v8133_v20 = vld [vmem:[#allocation126_spill] sm:$0xff] }
 0x454   :  { %5463 = vmatprep.subr.bf16.mxu1 %v8015_v9 }
 0x457   :  { %5465 = vmatpush3.bf16.msra.mxu1 %v5464_v44  ;;  %v8100_v44 = vpack.c.bf16 %v8098_v7, %v8099_v31  ;;  %v8135_v7 = vld [vmem:[#allocation131_spill] sm:$0xff] }
 0x458   :  { %5466 = vmatprep.subr.bf16.mxu1 %v8015_v9 }
 0x45b   :  { %5468 = vmatpush3.bf16.msra.mxu1 %v5467_v62  ;;  %v8103_v62 = vpack.c.bf16 %v8101_v61, %v8102_v48 }
 0x45c   :  { %5469 = vmatprep.subr.bf16.mxu1 %v8015_v9 }
 0x45f   :  { %5471 = vmatpush3.bf16.msra.mxu1 %v5470_v63  ;;  %v5548_v63 = vpack.c.bf16 %v8105_v6, %v8104_v28 }
 0x460   :  { %5472 = vmatprep.subr.bf16.mxu1 %v8015_v9 }
 0x463   :  { %5474 = vmatpush3.bf16.msra.mxu1 %v5473_v49  ;;  %v5551_v49 = vpack.c.bf16 %v8107_v26, %v8106_v23 }
 0x464   :  { %5475 = vmatprep.subr.bf16.mxu1 %v8015_v9 }
 0x466   :  { %4916 = vmatmul.mubr.f32.vlgmr.msra.gmra.mrb[0].mxu1 %v7164_v3  ;;  %v2419_v47 = vpop.xlane.xlu1 %2418 }
 0x467   :  { %5477 = vmatpush3.bf16.msra.mxu1 %v7016_v41  ;;  %5901 = vrcp.f32 %v2419_v47  ;;  %4950 = vmatprep.mubr.msk.f32.mxu1 %vm5980_vm2, %v5981_v55  ;;  %v8064_v41 = vld [vmem:[#allocation62_spill] sm:$0xff]  ;;  %v8108_v47 = vld [vmem:[#allocation84_spill] sm:$0xff] }
 0x468   :  { %5478 = vmatprep.subr.bf16.mxu1 %v8015_v9 }
 0x46b   :  { %5480 = vmatpush3.bf16.msra.mxu1 %v7116_v56  ;;  %v8065_v56 = vld [vmem:[#allocation71_spill] sm:$0xff] }
 0x46c   :  { %5481 = vmatprep.subr.bf16.mxu1 %v8015_v9 }
 0x46f   :  { %5483 = vmatpush3.bf16.msra.mxu1 %v7122_v35  ;;  %v7307_v35 = vpack.c.bf16 %v8065_v56, %v8064_v41  ;;  %v8110_v56 = vld [vmem:[#allocation96_spill] sm:$0xff] }
 0x470   :  { %5484 = vmatprep.subr.bf16.mxu1 %v8015_v9 }
 0x471   :  { %v7292_v39 = vpop.eup %5901 }
 0x472   :  { %v3740_v27 = vmul.f32 %v7292_v39, %v7159_v15 }
 0x473   :  { %5486 = vmatpush3.bf16.msra.mxu1 %v7127_v0  ;;  %v8066_v0 = vld [vmem:[#allocation72_spill] sm:$0xff] }
 0x474   :  { %5487 = vmatprep.subr.bf16.mxu1 %v8015_v9  ;;  %3741 = vst [vmem:[#allocation6] sm:$0x3] %v3740_v27  ;;  %v8109_v27 = vld [vmem:[#allocation89_spill] sm:$0xff] }
 0x475   :  { %v5554_v41 = vpack.c.bf16 %v8109_v27, %v8108_v47 }
 0x477   :  { %5489 = vmatpush3.bf16.msra.mxu1 %v7133_v51  ;;  %v8067_v51 = vld [vmem:[#allocation80_spill] sm:$0xff] }
 0x478   :  { %5490 = vmatprep.subr.bf16.mxu1 %v8015_v9 }
 0x47b   :  { %5492 = vmatpush3.bf16.msra.mxu1 %v7140_v54  ;;  %v7314_v54 = vpack.c.bf16 %v8067_v51, %v8066_v0  ;;  %v8111_v0 = vld [vmem:[#allocation99_spill] sm:$0xff] }
 0x47c   :  { %5493 = vmatprep.subr.bf16.mxu1 %v8015_v9  ;;  %v5557_v51 = vpack.c.bf16 %v8111_v0, %v8110_v56 }
 0x47f   :  { %5495 = vmatpush3.bf16.msra.mxu1 %v7145_v16  ;;  %v8068_v16 = vld [vmem:[#allocation81_spill] sm:$0xff] }
 0x480   :  { %5496 = vmatprep.subr.bf16.mxu1 %v8015_v9 }
 0x483   :  { %5498 = vmatpush3.bf16.msra.mxu1 %v7153_v59  ;;  %v8069_v59 = vld [vmem:[#allocation85_spill] sm:$0xff] }
 0x484   :  { %5499 = vmatprep.subr.bf16.mxu1 %v8015_v9  ;;  %v7322_v15 = vpack.c.bf16 %v8069_v59, %v8068_v16  ;;  %v8112_v16 = vld [vmem:[#allocation102_spill] sm:$0xff]  ;;  %v8113_v59 = vld [vmem:[#allocation104_spill] sm:$0xff] }
 0x486   :  { %4951 = vmatmul.mubr.f32.vlgmr.msra.gmra.mrb[0].mxu1 %v7164_v3  ;;  %v8070_v3 = vld [vmem:[#allocation92_spill] sm:$0xff] }
 0x487   :  { %5501 = vmatpush3.bf16.msra.mxu1 %v7307_v35  ;;  %4985 = vmatprep.mubr.msk.f32.mxu1 %vm5980_vm2, %v5981_v55  ;;  %v7328_v11 = vpack.c.bf16 %v8071_v32, %v8070_v3  ;;  %v5560_v3 = vpack.c.bf16 %v8113_v59, %v8112_v16  ;;  %v8114_v32 = vld [vmem:[#allocation111_spill] sm:$0xff] }
 0x488   :  { %5502 = vmatprep.subr.bf16.mxu1 %v8015_v9  ;;  %v5563_v14 = vpack.c.bf16 %v8115_v36, %v8114_v32 }
 0x48b   :  { %5504 = vmatpush3.bf16.msra.mxu1 %v7314_v54 }
 0x48c   :  { %5505 = vmatprep.subr.bf16.mxu1 %v8015_v9 }
 0x48f   :  { %5507 = vmatpush3.bf16.msra.mxu1 %v7322_v15 }
 0x490   :  { %5508 = vmatprep.subr.bf16.mxu1 %v8015_v9 }
 0x493   :  { %5510 = vmatpush3.bf16.msra.mxu1 %v7328_v11 }
 0x494   :  { %5511 = vmatprep.subr.bf16.mxu1 %v8015_v9 }
 0x497   :  { %5513 = vmatpush3.bf16.msra.mxu1 %v7334_v33 }
 0x498   :  { %5514 = vmatprep.subr.bf16.mxu1 %v8015_v9 }
 0x49b   :  { %5516 = vmatpush3.bf16.msra.mxu1 %v7343_v58 }
 0x49c   :  { %5517 = vmatprep.subr.bf16.mxu1 %v8015_v9 }
 0x49f   :  { %5519 = vmatpush3.bf16.msra.mxu1 %v7353_v2 }
 0x4a0   :  { %5520 = vmatprep.subr.bf16.mxu1 %v8015_v9 }
 0x4a3   :  { %5522 = vmatpush3.bf16.msra.mxu1 %v7360_v34 }
 0x4a4   :  { %5523 = vmatprep.subr.bf16.mxu1 %v8015_v9 }
 0x4a6   :  { %4986 = vmatmul.mubr.f32.vlgmr.msra.gmra.mrb[2].mxu1 %v3172_v24  ;;  %v8121_v24 = vld [vmem:[#allocation79_spill] sm:$0xff] }
 0x4a7   :  { %5525 = vmatpush3.bf16.msra.mxu1 %v8082_v21  ;;  %5020 = vmatprep.mubr.msk.f32.mxu1 %vm5980_vm2, %v5981_v55  ;;  %v5596_v4 = vpack.c.bf16 %v8121_v24, %v8120_v42  ;;  %v8123_v21 = vld [vmem:[#allocation87_spill] sm:$0xff] }
 0x4a8   :  { %5526 = vmatprep.subr.bf16.mxu1 %v8015_v9  ;;  %v5599_v29 = vpack.c.bf16 %v8123_v21, %v8122_v8 }
 0x4ab   :  { %5528 = vmatpush3.bf16.msra.mxu1 %v8085_v17  ;;  %v8125_v17 = vld [vmem:[#allocation91_spill] sm:$0xff] }
 0x4ac   :  { %5529 = vmatprep.subr.bf16.mxu1 %v8015_v9  ;;  %v5602_v18 = vpack.c.bf16 %v8125_v17, %v8124_v60 }
 0x4af   :  { %5531 = vmatpush3.bf16.msra.mxu1 %v8088_v43  ;;  %v8127_v43 = vld [vmem:[#allocation103_spill] sm:$0xff] }
 0x4b0   :  { %5532 = vmatprep.subr.bf16.mxu1 %v8015_v9 }
 0x4b3   :  { %5534 = vmatpush3.bf16.msra.mxu1 %v8091_v13  ;;  %v8130_v13 = vld [vmem:[#allocation116_spill] sm:$0xff] }
 0x4b4   :  { %5535 = vmatprep.subr.bf16.mxu1 %v8015_v9  ;;  %v5611_v25 = vpack.c.bf16 %v8131_v45, %v8130_v13 }
 0x4b7   :  { %5537 = vmatpush3.bf16.msra.mxu1 %v8094_v12  ;;  %v8132_v12 = vld [vmem:[#allocation120_spill] sm:$0xff] }
 0x4b8   :  { %5538 = vmatprep.subr.bf16.mxu1 %v8015_v9  ;;  %v5614_v22 = vpack.c.bf16 %v8133_v20, %v8132_v12 }
 0x4bb   :  { %5540 = vmatpush3.bf16.msra.mxu1 %v8097_v1  ;;  %v8134_v1 = vld [vmem:[#allocation130_spill] sm:$0xff] }
 0x4bc   :  { %5541 = vmatprep.subr.bf16.mxu1 %v8015_v9  ;;  %v5617_v31 = vpack.c.bf16 %v8135_v7, %v8134_v1 }
 0x4bf   :  { %5543 = vmatpush3.bf16.msra.mxu1 %v8100_v44 }
 0x4c0   :  { %5544 = vmatprep.subr.bf16.mxu1 %v8015_v9 }
 0x4c3   :  { %5546 = vmatpush3.bf16.msra.mxu1 %v8103_v62 }
 0x4c4   :  { %5547 = vmatprep.subr.bf16.mxu1 %v8015_v9 }
 0x4c6   :  { %5021 = vmatmul.mubr.f32.vlgmr.msra.gmra.mrb[2].mxu1 %v7338_v52 }
 0x4c7   :  { %5549 = vmatpush3.bf16.msra.mxu1 %v5548_v63  ;;  %5055 = vmatprep.mubr.msk.f32.mxu1 %vm5980_vm2, %v5981_v55 }
 0x4c8   :  { %5550 = vmatprep.subr.bf16.mxu1 %v8015_v9 }
 0x4cb   :  { %5552 = vmatpush3.bf16.msra.mxu1 %v5551_v49 }
 0x4cc   :  { %5553 = vmatprep.subr.bf16.mxu1 %v8015_v9 }
 0x4cf   :  { %5555 = vmatpush3.bf16.msra.mxu1 %v5554_v41 }
 0x4d0   :  { %5556 = vmatprep.subr.bf16.mxu1 %v8015_v9 }
 0x4d3   :  { %5558 = vmatpush3.bf16.msra.mxu1 %v5557_v51 }
 0x4d4   :  { %5559 = vmatprep.subr.bf16.mxu1 %v8015_v9 }
 0x4d7   :  { %5561 = vmatpush3.bf16.msra.mxu1 %v5560_v3 }
 0x4d8   :  { %5562 = vmatprep.subr.bf16.mxu1 %v8015_v9 }
 0x4db   :  { %5564 = vmatpush3.bf16.msra.mxu1 %v5563_v14 }
 0x4dc   :  { %5565 = vmatprep.subr.bf16.mxu1 %v8015_v9 }
 0x4df   :  { %5567 = vmatpush3.bf16.msra.mxu1 %v5566_v50 }
 0x4e0   :  { %5568 = vmatprep.subr.bf16.mxu1 %v8015_v9 }
 0x4e3   :  { %5570 = vmatpush3.bf16.msra.mxu1 %v5569_v38 }
 0x4e4   :  { %5571 = vmatprep.subr.bf16.mxu1 %v8015_v9 }
 0x4e6   :  { %5056 = vmatmul.mubr.f32.vlgmr.msra.gmra.mrb[2].mxu1 %v7348_v40  ;;  %v5605_v40 = vpack.c.bf16 %v8127_v43, %v8126_v19 }
 0x4e7   :  { %5573 = vmatpush3.bf16.msra.mxu1 %v7307_v35  ;;  %5090 = vmatprep.mubr.msk.f32.mxu1 %vm5980_vm2, %v5981_v55 }
 0x4e8   :  { %5574 = vmatprep.subr.bf16.mxu1 %v8015_v9 }
 0x4eb   :  { %5576 = vmatpush3.bf16.msra.mxu1 %v7314_v54 }
 0x4ec   :  { %5577 = vmatprep.subr.bf16.mxu1 %v8015_v9 }
 0x4ef   :  { %5579 = vmatpush3.bf16.msra.mxu1 %v7322_v15 }
 0x4f0   :  { %5580 = vmatprep.subr.bf16.mxu1 %v8015_v9 }
 0x4f3   :  { %5582 = vmatpush3.bf16.msra.mxu1 %v7328_v11 }
 0x4f4   :  { %5583 = vmatprep.subr.bf16.mxu1 %v8015_v9 }
 0x4f7   :  { %5585 = vmatpush3.bf16.msra.mxu1 %v7334_v33 }
 0x4f8   :  { %5586 = vmatprep.subr.bf16.mxu1 %v8015_v9 }
 0x4fb   :  { %5588 = vmatpush3.bf16.msra.mxu1 %v7343_v58 }
 0x4fc   :  { %5589 = vmatprep.subr.bf16.mxu1 %v8015_v9 }
 0x4ff   :  { %5591 = vmatpush3.bf16.msra.mxu1 %v7353_v2 }
 0x500   :  { %5592 = vmatprep.subr.bf16.mxu1 %v8015_v9 }
 0x503   :  { %5594 = vmatpush3.bf16.msra.mxu1 %v7360_v34 }
 0x504   :  { %5595 = vmatprep.subr.bf16.mxu1 %v8015_v9 }
 0x506   :  { %5091 = vmatmul.mubr.f32.vlgmr.msra.gmra.mrb[2].mxu1 %v3170_v53  ;;  %v8128_v53 = vld [vmem:[#allocation105_spill] sm:$0xff] }
 0x507   :  { %5597 = vmatpush3.bf16.msra.mxu1 %v5596_v4  ;;  %5125 = vmatprep.mubr.msk.f32.mxu1 %vm5980_vm2, %v5981_v55  ;;  %v5608_v37 = vpack.c.bf16 %v8129_v10, %v8128_v53 }
 0x508   :  { %5598 = vmatprep.subr.bf16.mxu1 %v8015_v9 }
 0x50b   :  { %5600 = vmatpush3.bf16.msra.mxu1 %v5599_v29 }
 0x50c   :  { %5601 = vmatprep.subr.bf16.mxu1 %v8015_v9 }
 0x50f   :  { %5603 = vmatpush3.bf16.msra.mxu1 %v5602_v18 }
 0x510   :  { %5604 = vmatprep.subr.bf16.mxu1 %v8015_v9 }
 0x513   :  { %5606 = vmatpush3.bf16.msra.mxu1 %v5605_v40 }
 0x514   :  { %5607 = vmatprep.subr.bf16.mxu1 %v8015_v9 }
 0x517   :  { %5609 = vmatpush3.bf16.msra.mxu1 %v5608_v37 }
 0x518   :  { %5610 = vmatprep.subr.bf16.mxu1 %v8015_v9 }
 0x51b   :  { %5612 = vmatpush3.bf16.msra.mxu1 %v5611_v25 }
 0x51c   :  { %5613 = vmatprep.subr.bf16.mxu1 %v8015_v9 }
 0x51f   :  { %5615 = vmatpush3.bf16.msra.mxu1 %v5614_v22 }
 0x520   :  { %5616 = vmatprep.subr.bf16.mxu1 %v8015_v9 }
 0x523   :  { %5618 = vmatpush3.bf16.msra.mxu1 %v5617_v31 }
 0x524   :  { %5619 = vmatprep.subr.bf16.mxu1 %v8015_v9 }
 0x526   :  { %5126 = vmatmul.mubr.f32.vlgmr.msra.gmra.mrb[2].mxu1 %v7338_v52 }
 0x527   :  { %5621 = vmatpush3.bf16.msra.mxu1 %v7307_v35  ;;  %5160 = vmatprep.mubr.msk.f32.mxu1 %vm5980_vm2, %v5981_v55 }
 0x528   :  { %5622 = vmatprep.subr.bf16.mxu1 %v8015_v9 }
 0x52b   :  { %5624 = vmatpush3.bf16.msra.mxu1 %v7314_v54 }
 0x52c   :  { %5625 = vmatprep.subr.bf16.mxu1 %v8015_v9 }
 0x52f   :  { %5627 = vmatpush3.bf16.msra.mxu1 %v7322_v15 }
 0x530   :  { %5628 = vmatprep.subr.bf16.mxu1 %v8015_v9 }
 0x533   :  { %5630 = vmatpush3.bf16.msra.mxu1 %v7328_v11 }
 0x534   :  { %5631 = vmatprep.subr.bf16.mxu1 %v8015_v9 }
 0x537   :  { %5633 = vmatpush3.bf16.msra.mxu1 %v7334_v33 }
 0x538   :  { %5634 = vmatprep.subr.bf16.mxu1 %v8015_v9 }
 0x53b   :  { %5636 = vmatpush3.bf16.msra.mxu1 %v7343_v58 }
 0x53c   :  { %5637 = vmatprep.subr.bf16.mxu1 %v8015_v9 }
 0x53f   :  { %5639 = vmatpush3.bf16.msra.mxu1 %v7353_v2 }
 0x540   :  { %5640 = vmatprep.subr.bf16.mxu1 %v8015_v9 }
 0x543   :  { %5642 = vmatpush3.bf16.msra.mxu1 %v7360_v34 }
 0x546   :  { %5161 = vmatmul.mubr.f32.vlgmr.msra.gmra.mrb[2].mxu1 %v7338_v52 }
 0x559   :  { %v3083_v55 = vpop.f32.mrb[0].mxu1 }
 0x55a   :  { %v4952_v35 = vpop.f32.mrb[1].mxu1 }
 0x55b   :  { %5936 = shalt.err (!%p5933_p12)
}
 0x55c   :  { %s5937_s12 = scalar_lea.hbm %s7526_s4, 32 }
 0x55d   :  { %p5938_p13 = scmp.ne.s32.totalorder %s7526_s4, %s5937_s12  ;;  %p5941_p0 = scmp.lt.u32.totalorder %s5937_s12, %s7526_s4 }
 0x55f   :  { %p5943_p1 = pnand %p5941_p0, %p5938_p13 }
 0x561   :  { %5946 = shalt.err (!%p5943_p1)
}
 0x562   :  { %3761 = dma.vmem_to_hbm [thread:$0]  %s3759_s9, 32, %s7526_s4, [#allocation7]   ;;  %v3729_v9 = vrot.slane %v7292_v39, 1  ;;  %v3732_v33 = vmul.f32 %v7292_v39, %v3083_v55 }
 0x563   :  { %s5984_s19 = smov [#allocation5]  }
 0x564   :  { %s3748_s20 = sshll.u32 %s5984_s19, 4  ;;  %s3749_s20 = int_to_ptr.vmem [resolvable:$true] %s3748_s20 }
 0x565   :  { %s5947_s21 = scalar_lea.vmem %s3749_s20, 32  ;;  %p5952_p3 = scmp.lt.s32.totalorder %s3749_s20, %s3749_s20 }
 0x566   :  { %p5948_p2 = scmp.ne.s32.totalorder %s3749_s20, %s5947_s21  ;;  %p5953_p4 = scmp.lt.s32.totalorder %s5947_s21, %s5947_s21 }
 0x568   :  { %p5954_p5 = por %p5953_p4, %p5952_p3 }
 0x56a   :  { %p5955_p6 = pnand %p5954_p5, %p5948_p2 }
 0x619   :  { %v3724_v54 = vpop.f32.mrb[2].mxu1 }
 0x61a   :  { %v3733_v15 = vmul.f32 %v3729_v9, %v3724_v54  ;;  %v5162_v11 = vpop.f32.mrb[3].mxu1 }
 0x61c   :  { %v3736_v52 = vrot.slane %v3733_v15, 7 }
 0x61e   :  { %v3737_v58 = vsel %vm2406_vm15, %v3736_v52, %v3732_v33 }
 0x61f   :  { %3739 = vst [vmem:[#allocation5] sm:$0x3] %v3737_v58 }
 0x620   :  { %5958 = shalt.err (!%p5955_p6)
}
 0x621   :  { %s5959_s23 = scalar_lea.hbm %s7525_s3, 32 }
 0x622   :  { %p5960_p7 = scmp.ne.s32.totalorder %s7525_s3, %s5959_s23  ;;  %p5963_p8 = scmp.lt.u32.totalorder %s5959_s23, %s7525_s3 }
 0x624   :  { %p5965_p9 = pnand %p5963_p8, %p5960_p7 }
 0x626   :  { %5968 = shalt.err (!%p5965_p9)
}
 0x627   :  { %3751 = dma.vmem_to_hbm [thread:$0]  %s3749_s20, 32, %s7525_s3, [#allocation4]  }
 0x628   :  { %5971 = dma.done.wait [#allocation4], 32  }
 0x629   :  { %5972 = vsyncadd [#allocation4], 4294967264 }
 0x62a   :  { %5973 = dma.done.wait [#allocation7], 32  }
 0x62b   :  { %5974 = vsyncadd [#allocation7], 4294967264 }
 0x62c   :  { %3768 = vsyncpa [#allocation3], 1 }
 0x62d   :  { %3769 = vsyncpa [#allocation4], 1 }
 0x62e   :  { %3770 = vsyncpa [#allocation7], 1 }

</bundles_post_ra>
